<compile_context>
chip_gen: v5e
topology: v5e:2x2
jax: 0.10.0
libtpu: 0.0.40
codegen_flags: <defaults>
</compile_context>

<pallas_src>
import math
import functools

import jax
import jax.numpy as jnp
from jax.experimental import pallas as pl
from jax.experimental.pallas import tpu as pltpu

NEG_INF = -1e9
_VMEM_LIMIT = 48 * 1024 * 1024   # below v7x 64 MiB physical, above default scoped limits


def _layer_norm(x, g, b, eps=1e-6):
    # Matches BERT-pytorch custom LayerNorm: a2*(x-mean)/(std+eps)+b2, unbiased std.
    mean = jnp.mean(x, axis=-1, keepdims=True)
    var = jnp.sum((x - mean) ** 2, axis=-1, keepdims=True) / (x.shape[-1] - 1)
    return g * (x - mean) / (jnp.sqrt(var) + eps) + b


def _gelu(x):
    # tanh-approx GELU as used in BERT-pytorch.
    return 0.5 * x * (1.0 + jnp.tanh(0.7978845608028654 * (x + 0.044715 * x * x * x)))


# --------------------------------------------------------------------------
# Fused transformer block kernel:
#   pre-LN multi-head self-attention (+ residual)  ->  pre-LN FFN (+ residual)
# grid = (B, S // TQ).  LN1(x), K and V for the full sequence live in VMEM
# scratch and are computed once per batch element (inner q-tile axis is
# "arbitrary"); every query tile then does Q-proj, attention, output-proj,
# residual, LN2, FFN and the final residual before writing its output rows.
# --------------------------------------------------------------------------
def _block_kernel(n_heads,
                  bias_ref, x_ref,
                  ln1g_ref, ln1b_ref,
                  wq_ref, bq_ref, wk_ref, bk_ref, wv_ref, bv_ref,
                  wo_ref, bo_ref,
                  ln2g_ref, ln2b_ref,
                  w1_ref, b1_ref, w2_ref, b2_ref,
                  o_ref,
                  ln_sc, k_sc, v_sc):
    qi = pl.program_id(1)
    S, H = x_ref.shape[1], x_ref.shape[2]
    TQ = o_ref.shape[1]
    dh = H // n_heads
    scale = 1.0 / math.sqrt(dh)

    # LN1 / K / V for the whole sequence: compute once per batch element.
    @pl.when(qi == 0)
    def _():
        ln_full = _layer_norm(x_ref[0], ln1g_ref[...], ln1b_ref[...]).astype(jnp.bfloat16)
        ln_sc[...] = ln_full                                                 # (S, H) bf16
        k = jnp.dot(ln_full, wk_ref[...],
                    preferred_element_type=jnp.float32) + bk_ref[...]
        v = jnp.dot(ln_full, wv_ref[...],
                    preferred_element_type=jnp.float32) + bv_ref[...]
        k_sc[...] = k.astype(jnp.bfloat16)
        v_sc[...] = v.astype(jnp.bfloat16)

    row0 = pl.multiple_of(qi * TQ, TQ)
    x_rows = x_ref[0, pl.ds(row0, TQ), :]                                    # (TQ, H) f32
    ln_q = ln_sc[pl.ds(row0, TQ), :]                                         # (TQ, H) bf16
    q = jnp.dot(ln_q, wq_ref[...],
                preferred_element_type=jnp.float32) + bq_ref[...]            # (TQ, H) f32

    # Batched per-head contraction (single MXU-friendly einsum per step).
    qh = jnp.transpose(q.astype(jnp.bfloat16).reshape(TQ, n_heads, dh), (1, 0, 2))
    kh = jnp.transpose(k_sc[...].reshape(S, n_heads, dh), (1, 0, 2))
    vh = jnp.transpose(v_sc[...].reshape(S, n_heads, dh), (1, 0, 2))

    s = jnp.einsum("hqd,hkd->hqk", qh, kh,
                   preferred_element_type=jnp.float32) * scale               # (h, TQ, S)
    s = s + bias_ref[0]                                                      # additive key mask
    s = s - jnp.max(s, axis=-1, keepdims=True)
    p = jnp.exp(s)
    p = p * pl.reciprocal(jnp.sum(p, axis=-1, keepdims=True), approx=True)

    ctx = jnp.einsum("hqk,hkd->hqd", p.astype(jnp.bfloat16), vh,
                     preferred_element_type=jnp.float32)                     # (h, TQ, dh)
    ctx = jnp.transpose(ctx, (1, 0, 2)).reshape(TQ, H).astype(jnp.bfloat16)
    attn = jnp.dot(ctx, wo_ref[...],
                   preferred_element_type=jnp.float32) + bo_ref[...]
    x_attn = x_rows + attn                                                   # dropout = identity

    # Position-wise feed-forward sublayer (pre-LN, residual).
    ln2 = _layer_norm(x_attn, ln2g_ref[...], ln2b_ref[...]).astype(jnp.bfloat16)
    h = jnp.dot(ln2, w1_ref[...],
                preferred_element_type=jnp.float32) + b1_ref[...]            # (TQ, 4H) f32
    h = _gelu(h).astype(jnp.bfloat16)
    y = jnp.dot(h, w2_ref[...],
                preferred_element_type=jnp.float32) + b2_ref[...]
    o_ref[0] = (x_attn + y).astype(o_ref.dtype)                              # dropout = identity


_BLOCK_PARAMS = ("ln1_g", "ln1_b", "wq", "bq", "wk", "bk", "wv", "bv", "wo", "bo",
                 "ln2_g", "ln2_b", "w1", "b1", "w2", "b2")


def _weight_specs(n):
    # Grid-invariant weights: single resident copy in VMEM (no double buffering).
    return [pl.BlockSpec(memory_space=pltpu.MemorySpace.VMEM) for _ in range(n)]


def _seq_tile(s, target=256):
    if s <= target:
        return s
    for t in (target, 128, 64, 32, 16, 8):
        if s % t == 0:
            return t
    return s


def transformer_block(x, mask_bias, layer, n_heads, tq):
    B, S, H = x.shape
    assert S % tq == 0
    weights = [layer[k] for k in _BLOCK_PARAMS]
    kernel = functools.partial(_block_kernel, n_heads)
    return pl.pallas_call(
        kernel,
        out_shape=jax.ShapeDtypeStruct((B, S, H), jnp.float32),
        grid=(B, S // tq),
        in_specs=[pl.BlockSpec((1, 1, S), lambda b, q: (b, 0, 0)),   # additive key-mask bias
                  pl.BlockSpec((1, S, H), lambda b, q: (b, 0, 0))]   # full sequence (for K/V)
                 + _weight_specs(len(weights)),
        out_specs=pl.BlockSpec((1, tq, H), lambda b, q: (b, q, 0)),
        scratch_shapes=[pltpu.VMEM((S, H), jnp.bfloat16),            # LN1(x) (full sequence)
                        pltpu.VMEM((S, H), jnp.bfloat16),            # K (full sequence)
                        pltpu.VMEM((S, H), jnp.bfloat16)],           # V (full sequence)
        compiler_params=pltpu.CompilerParams(
            dimension_semantics=("parallel", "arbitrary"),
            vmem_limit_bytes=_VMEM_LIMIT),
    )(mask_bias, x, *weights)


def sinusoidal_pos_emb(max_len, d_model):
    pos = jnp.arange(max_len, dtype=jnp.float32)[:, None]
    div = jnp.exp(jnp.arange(0, d_model, 2, dtype=jnp.float32)
                  * -(math.log(10000.0) / d_model))
    pe = jnp.zeros((max_len, d_model), jnp.float32)
    pe = pe.at[:, 0::2].set(jnp.sin(pos * div))
    pe = pe.at[:, 1::2].set(jnp.cos(pos * div))
    return pe


def init_bert_params(key, vocab_size, hidden, n_layers, max_len=64):
    keys = jax.random.split(key, 2 + n_layers)
    scale = 0.02
    d_ff = hidden * 4
    bf16 = jnp.bfloat16
    tok = scale * jax.random.normal(keys[0], (vocab_size, hidden), jnp.float32)
    tok = tok.at[0].set(0.0)   # nn.Embedding padding_idx=0
    seg = scale * jax.random.normal(keys[1], (3, hidden), jnp.float32)
    seg = seg.at[0].set(0.0)   # nn.Embedding padding_idx=0
    layers = []
    for i in range(n_layers):
        lk = jax.random.split(keys[2 + i], 6)
        layers.append(dict(
            ln1_g=jnp.ones((1, hidden), jnp.float32),
            ln1_b=jnp.zeros((1, hidden), jnp.float32),
            wq=(scale * jax.random.normal(lk[0], (hidden, hidden), jnp.float32)).astype(bf16),
            bq=jnp.zeros((1, hidden), jnp.float32),
            wk=(scale * jax.random.normal(lk[1], (hidden, hidden), jnp.float32)).astype(bf16),
            bk=jnp.zeros((1, hidden), jnp.float32),
            wv=(scale * jax.random.normal(lk[2], (hidden, hidden), jnp.float32)).astype(bf16),
            bv=jnp.zeros((1, hidden), jnp.float32),
            wo=(scale * jax.random.normal(lk[3], (hidden, hidden), jnp.float32)).astype(bf16),
            bo=jnp.zeros((1, hidden), jnp.float32),
            ln2_g=jnp.ones((1, hidden), jnp.float32),
            ln2_b=jnp.zeros((1, hidden), jnp.float32),
            w1=(scale * jax.random.normal(lk[4], (hidden, d_ff), jnp.float32)).astype(bf16),
            b1=jnp.zeros((1, d_ff), jnp.float32),
            w2=(scale * jax.random.normal(lk[5], (d_ff, hidden), jnp.float32)).astype(bf16),
            b2=jnp.zeros((1, hidden), jnp.float32),
        ))
    return dict(tok_emb=tok, seg_emb=seg,
                pos_emb=sinusoidal_pos_emb(max_len, hidden), layers=layers)


def bert_forward(params, token_ids, segment_ids, n_heads):
    B, S = token_ids.shape
    # BERTEmbedding: token + sinusoidal position + segment; dropout = identity.
    x = (params["tok_emb"][token_ids]
         + params["pos_emb"][None, :S, :]
         + params["seg_emb"][segment_ids]).astype(jnp.float32)
    # mask = (x>0).unsqueeze(1).repeat(1,S,1).unsqueeze(1) masks KEY positions;
    # precompute it once as an additive 0 / -1e9 bias, shape (B, 1, S).
    mask_bias = jnp.where(token_ids > 0, 0.0, NEG_INF).astype(jnp.float32)[:, None, :]
    tq = _seq_tile(S)
    for layer in params["layers"]:
        x = transformer_block(x, mask_bias, layer, n_heads, tq)
    return x


if __name__ == "__main__":
    VOCAB, HIDDEN, N_LAYERS, N_HEADS = 32, 32, 2, 4
    B, S = 2, 8

    key = jax.random.PRNGKey(0)
    kp, kt, ks = jax.random.split(key, 3)

    params = init_bert_params(kp, VOCAB, HIDDEN, N_LAYERS, max_len=S)

    token_ids = jax.random.randint(kt, (B, S), 0, VOCAB)
    token_ids = token_ids.at[:, -2:].set(0)   # padding tokens to exercise the mask
    token_ids = token_ids.at[:, 0].set(1)     # ensure at least one real token
    segment_ids = jax.random.randint(ks, (B, S), 1, 3)

    out = bert_forward(params, token_ids, segment_ids, N_HEADS)
    out = jax.block_until_ready(out)

    assert out.shape == (B, S, HIDDEN)
    assert bool(jnp.all(jnp.isfinite(out)))
    print("KERNEL_OK")
</pallas_src>

<mosaic_0001>
module attributes {stable_mosaic.version = 11 : i64} {
  func.func @_block_kernel(%arg0: i32, %arg1: i32, %arg2: memref<1x1x8xf32, #tpu.memory_space<vmem>>, %arg3: memref<1x8x32xf32, #tpu.memory_space<vmem>>, %arg4: memref<1x32xf32, #tpu.memory_space<vmem>>, %arg5: memref<1x32xf32, #tpu.memory_space<vmem>>, %arg6: memref<32x32xbf16, #tpu.memory_space<vmem>>, %arg7: memref<1x32xf32, #tpu.memory_space<vmem>>, %arg8: memref<32x32xbf16, #tpu.memory_space<vmem>>, %arg9: memref<1x32xf32, #tpu.memory_space<vmem>>, %arg10: memref<32x32xbf16, #tpu.memory_space<vmem>>, %arg11: memref<1x32xf32, #tpu.memory_space<vmem>>, %arg12: memref<32x32xbf16, #tpu.memory_space<vmem>>, %arg13: memref<1x32xf32, #tpu.memory_space<vmem>>, %arg14: memref<1x32xf32, #tpu.memory_space<vmem>>, %arg15: memref<1x32xf32, #tpu.memory_space<vmem>>, %arg16: memref<32x128xbf16, #tpu.memory_space<vmem>>, %arg17: memref<1x128xf32, #tpu.memory_space<vmem>>, %arg18: memref<128x32xbf16, #tpu.memory_space<vmem>>, %arg19: memref<1x32xf32, #tpu.memory_space<vmem>>, %arg20: memref<1x8x32xf32, #tpu.memory_space<vmem>>, %arg21: memref<8x32xbf16, #tpu.memory_space<vmem>>, %arg22: memref<8x32xbf16, #tpu.memory_space<vmem>>, %arg23: memref<8x32xbf16, #tpu.memory_space<vmem>>) attributes {dimension_semantics = [#tpu.dimension_semantics<parallel>, #tpu.dimension_semantics<arbitrary>], iteration_bounds = array<i64: 2, 1>, scalar_prefetch = 0 : i64, scratch_operands = 3 : i64, tpu.core_type = #tpu.core_type<tc>, window_params = [{transform_indices = @transform_0, window_bounds = array<i64: 1, 1, 8>}, {transform_indices = @transform_1, window_bounds = array<i64: 1, 8, 32>}, {pipeline_mode = #tpu.pipeline_mode<synchronous>, transform_indices = @transform_2, window_bounds = array<i64: 1, 32>}, {pipeline_mode = #tpu.pipeline_mode<synchronous>, transform_indices = @transform_3, window_bounds = array<i64: 1, 32>}, {pipeline_mode = #tpu.pipeline_mode<synchronous>, transform_indices = @transform_4, window_bounds = array<i64: 32, 32>}, {pipeline_mode = #tpu.pipeline_mode<synchronous>, transform_indices = @transform_5, window_bounds = array<i64: 1, 32>}, {pipeline_mode = #tpu.pipeline_mode<synchronous>, transform_indices = @transform_6, window_bounds = array<i64: 32, 32>}, {pipeline_mode = #tpu.pipeline_mode<synchronous>, transform_indices = @transform_7, window_bounds = array<i64: 1, 32>}, {pipeline_mode = #tpu.pipeline_mode<synchronous>, transform_indices = @transform_8, window_bounds = array<i64: 32, 32>}, {pipeline_mode = #tpu.pipeline_mode<synchronous>, transform_indices = @transform_9, window_bounds = array<i64: 1, 32>}, {pipeline_mode = #tpu.pipeline_mode<synchronous>, transform_indices = @transform_10, window_bounds = array<i64: 32, 32>}, {pipeline_mode = #tpu.pipeline_mode<synchronous>, transform_indices = @transform_11, window_bounds = array<i64: 1, 32>}, {pipeline_mode = #tpu.pipeline_mode<synchronous>, transform_indices = @transform_12, window_bounds = array<i64: 1, 32>}, {pipeline_mode = #tpu.pipeline_mode<synchronous>, transform_indices = @transform_13, window_bounds = array<i64: 1, 32>}, {pipeline_mode = #tpu.pipeline_mode<synchronous>, transform_indices = @transform_14, window_bounds = array<i64: 32, 128>}, {pipeline_mode = #tpu.pipeline_mode<synchronous>, transform_indices = @transform_15, window_bounds = array<i64: 1, 128>}, {pipeline_mode = #tpu.pipeline_mode<synchronous>, transform_indices = @transform_16, window_bounds = array<i64: 128, 32>}, {pipeline_mode = #tpu.pipeline_mode<synchronous>, transform_indices = @transform_17, window_bounds = array<i64: 1, 32>}, {transform_indices = @transform_18, window_bounds = array<i64: 1, 8, 32>}]} {
    %c0_i32 = arith.constant 0 : i32
    %0 = arith.cmpi eq, %arg1, %c0_i32 : i32
    %1 = arith.extui %0 : i1 to i32
    %c0_i32_0 = arith.constant 0 : i32
    %2 = arith.cmpi ne, %1, %c0_i32_0 : i32
    scf.if %2 {
      %c0_50 = arith.constant 0 : index
      %c0_51 = arith.constant 0 : index
      %c0_52 = arith.constant 0 : index
      %106 = vector.load %arg3[%c0_50, %c0_51, %c0_52] : memref<1x8x32xf32, #tpu.memory_space<vmem>>, vector<1x8x32xf32>
      %107 = vector.shape_cast %106 : vector<1x8x32xf32> to vector<8x32xf32>
      %c0_53 = arith.constant 0 : index
      %c0_54 = arith.constant 0 : index
      %108 = vector.load %arg4[%c0_53, %c0_54] : memref<1x32xf32, #tpu.memory_space<vmem>>, vector<1x32xf32>
      %c0_55 = arith.constant 0 : index
      %c0_56 = arith.constant 0 : index
      %109 = vector.load %arg5[%c0_55, %c0_56] : memref<1x32xf32, #tpu.memory_space<vmem>>, vector<1x32xf32>
      %cst_57 = arith.constant dense<0.000000e+00> : vector<8xf32>
      %110 = vector.multi_reduction <add>, %107, %cst_57 [1] : vector<8x32xf32> to vector<8xf32>
      %111 = vector.shape_cast %110 : vector<8xf32> to vector<8x1xf32>
      %cst_58 = arith.constant 3.200000e+01 : f32
      %112 = vector.broadcast %cst_58 : f32 to vector<8x1xf32>
      %113 = arith.divf %111, %112 : vector<8x1xf32>
      %114 = vector.broadcast %113 : vector<8x1xf32> to vector<8x32xf32>
      %115 = arith.subf %107, %114 : vector<8x32xf32>
      %116 = arith.mulf %115, %115 : vector<8x32xf32>
      %cst_59 = arith.constant dense<0.000000e+00> : vector<8xf32>
      %117 = vector.multi_reduction <add>, %116, %cst_59 [1] : vector<8x32xf32> to vector<8xf32>
      %118 = vector.shape_cast %117 : vector<8xf32> to vector<8x1xf32>
      %cst_60 = arith.constant 3.100000e+01 : f32
      %119 = vector.broadcast %cst_60 : f32 to vector<8x1xf32>
      %120 = arith.divf %118, %119 : vector<8x1xf32>
      %121 = vector.broadcast %113 : vector<8x1xf32> to vector<8x32xf32>
      %122 = arith.subf %107, %121 : vector<8x32xf32>
      %123 = vector.broadcast %108 : vector<1x32xf32> to vector<8x32xf32>
      %124 = arith.mulf %123, %122 : vector<8x32xf32>
      %125 = math.sqrt %120 : vector<8x1xf32>
      %cst_61 = arith.constant 9.99999997E-7 : f32
      %126 = vector.broadcast %cst_61 : f32 to vector<8x1xf32>
      %127 = arith.addf %125, %126 : vector<8x1xf32>
      %128 = vector.broadcast %127 : vector<8x1xf32> to vector<8x32xf32>
      %129 = arith.divf %124, %128 : vector<8x32xf32>
      %130 = vector.broadcast %109 : vector<1x32xf32> to vector<8x32xf32>
      %131 = arith.addf %129, %130 : vector<8x32xf32>
      %132 = arith.truncf %131 : vector<8x32xf32> to vector<8x32xbf16>
      %c0_62 = arith.constant 0 : index
      %c0_63 = arith.constant 0 : index
      %133 = vector.load %arg21[%c0_62, %c0_63] : memref<8x32xbf16, #tpu.memory_space<vmem>>, vector<8x32xbf16>
      tpu.vector_store %arg21[%c0_62, %c0_63], %132 {strides = array<i32>} : memref<8x32xbf16, #tpu.memory_space<vmem>>, vector<8x32xbf16>,
      %c0_64 = arith.constant 0 : index
      %c0_65 = arith.constant 0 : index
      %134 = vector.load %arg8[%c0_64, %c0_65] : memref<32x32xbf16, #tpu.memory_space<vmem>>, vector<32x32xbf16>
      %cst_66 = arith.constant dense<0.000000e+00> : vector<8x32xf32>
      %135 = tpu.matmul %132, %134, %cst_66 {dimension_numbers = #tpu.dot_dimension_numbers<[1], [0], [0], [1], [0, 0, 1, 1], [], []>} : vector<8x32xbf16>, vector<32x32xbf16>, vector<8x32xf32> -> vector<8x32xf32>
      %c0_67 = arith.constant 0 : index
      %c0_68 = arith.constant 0 : index
      %136 = vector.load %arg9[%c0_67, %c0_68] : memref<1x32xf32, #tpu.memory_space<vmem>>, vector<1x32xf32>
      %137 = vector.broadcast %136 : vector<1x32xf32> to vector<8x32xf32>
      %138 = arith.addf %135, %137 : vector<8x32xf32>
      %c0_69 = arith.constant 0 : index
      %c0_70 = arith.constant 0 : index
      %139 = vector.load %arg10[%c0_69, %c0_70] : memref<32x32xbf16, #tpu.memory_space<vmem>>, vector<32x32xbf16>
      %cst_71 = arith.constant dense<0.000000e+00> : vector<8x32xf32>
      %140 = tpu.matmul %132, %139, %cst_71 {dimension_numbers = #tpu.dot_dimension_numbers<[1], [0], [0], [1], [0, 0, 1, 1], [], []>} : vector<8x32xbf16>, vector<32x32xbf16>, vector<8x32xf32> -> vector<8x32xf32>
      %c0_72 = arith.constant 0 : index
      %c0_73 = arith.constant 0 : index
      %141 = vector.load %arg11[%c0_72, %c0_73] : memref<1x32xf32, #tpu.memory_space<vmem>>, vector<1x32xf32>
      %142 = vector.broadcast %141 : vector<1x32xf32> to vector<8x32xf32>
      %143 = arith.addf %140, %142 : vector<8x32xf32>
      %144 = arith.truncf %138 : vector<8x32xf32> to vector<8x32xbf16>
      %c0_74 = arith.constant 0 : index
      %c0_75 = arith.constant 0 : index
      %145 = vector.load %arg22[%c0_74, %c0_75] : memref<8x32xbf16, #tpu.memory_space<vmem>>, vector<8x32xbf16>
      tpu.vector_store %arg22[%c0_74, %c0_75], %144 {strides = array<i32>} : memref<8x32xbf16, #tpu.memory_space<vmem>>, vector<8x32xbf16>,
      %146 = arith.truncf %143 : vector<8x32xf32> to vector<8x32xbf16>
      %c0_76 = arith.constant 0 : index
      %c0_77 = arith.constant 0 : index
      %147 = vector.load %arg23[%c0_76, %c0_77] : memref<8x32xbf16, #tpu.memory_space<vmem>>, vector<8x32xbf16>
      tpu.vector_store %arg23[%c0_76, %c0_77], %146 {strides = array<i32>} : memref<8x32xbf16, #tpu.memory_space<vmem>>, vector<8x32xbf16>,
    } else {
    }
    %c8_i32 = arith.constant 8 : i32
    %3 = arith.muli %arg1, %c8_i32 : i32
    %4 = tpu.assume_multiple %3, 8 : i32
    %c0 = arith.constant 0 : index
    %5 = arith.index_cast %4 : i32 to index
    %c0_1 = arith.constant 0 : index
    %6 = vector.load %arg3[%c0, %5, %c0_1] : memref<1x8x32xf32, #tpu.memory_space<vmem>>, vector<1x8x32xf32>
    %7 = vector.shape_cast %6 : vector<1x8x32xf32> to vector<8x32xf32>
    %8 = arith.index_cast %4 : i32 to index
    %c0_2 = arith.constant 0 : index
    %9 = vector.load %arg21[%8, %c0_2] : memref<8x32xbf16, #tpu.memory_space<vmem>>, vector<8x32xbf16>
    %c0_3 = arith.constant 0 : index
    %c0_4 = arith.constant 0 : index
    %10 = vector.load %arg6[%c0_3, %c0_4] : memref<32x32xbf16, #tpu.memory_space<vmem>>, vector<32x32xbf16>
    %cst = arith.constant dense<0.000000e+00> : vector<8x32xf32>
    %11 = tpu.matmul %9, %10, %cst {dimension_numbers = #tpu.dot_dimension_numbers<[1], [0], [0], [1], [0, 0, 1, 1], [], []>} : vector<8x32xbf16>, vector<32x32xbf16>, vector<8x32xf32> -> vector<8x32xf32>
    %c0_5 = arith.constant 0 : index
    %c0_6 = arith.constant 0 : index
    %12 = vector.load %arg7[%c0_5, %c0_6] : memref<1x32xf32, #tpu.memory_space<vmem>>, vector<1x32xf32>
    %13 = vector.broadcast %12 : vector<1x32xf32> to vector<8x32xf32>
    %14 = arith.addf %11, %13 : vector<8x32xf32>
    %15 = arith.truncf %14 : vector<8x32xf32> to vector<8x32xbf16>
    %16 = vector.shape_cast %15 : vector<8x32xbf16> to vector<8x4x8xbf16>
    %17 = tpu.transpose %16, [1, 0, 2] : vector<8x4x8xbf16> -> vector<4x8x8xbf16>
    %c0_7 = arith.constant 0 : index
    %c0_8 = arith.constant 0 : index
    %18 = vector.load %arg22[%c0_7, %c0_8] : memref<8x32xbf16, #tpu.memory_space<vmem>>, vector<8x32xbf16>
    %19 = vector.shape_cast %18 : vector<8x32xbf16> to vector<8x4x8xbf16>
    %20 = tpu.transpose %19, [1, 0, 2] : vector<8x4x8xbf16> -> vector<4x8x8xbf16>
    %c0_9 = arith.constant 0 : index
    %c0_10 = arith.constant 0 : index
    %21 = vector.load %arg23[%c0_9, %c0_10] : memref<8x32xbf16, #tpu.memory_space<vmem>>, vector<8x32xbf16>
    %22 = vector.shape_cast %21 : vector<8x32xbf16> to vector<8x4x8xbf16>
    %23 = tpu.transpose %22, [1, 0, 2] : vector<8x4x8xbf16> -> vector<4x8x8xbf16>
    "tpu.trace_start"() <{level = 10 : i32, message = "hqd,hkd->hqk"}> : () -> ()
    %cst_11 = arith.constant dense<0.000000e+00> : vector<4x8x8xf32>
    %24 = tpu.matmul %17, %20, %cst_11 {dimension_numbers = #tpu.dot_dimension_numbers<[2], [2], [1], [1], [0, 0, 0, 1, 1, 1], [0], [0]>} : vector<4x8x8xbf16>, vector<4x8x8xbf16>, vector<4x8x8xf32> -> vector<4x8x8xf32>
    "tpu.trace_stop"() : () -> ()
    %cst_12 = arith.constant 0.353553385 : f32
    %25 = vector.broadcast %cst_12 : f32 to vector<4x8x8xf32>
    %26 = arith.mulf %24, %25 : vector<4x8x8xf32>
    %c0_13 = arith.constant 0 : index
    %c0_14 = arith.constant 0 : index
    %c0_15 = arith.constant 0 : index
    %27 = vector.load %arg2[%c0_13, %c0_14, %c0_15] : memref<1x1x8xf32, #tpu.memory_space<vmem>>, vector<1x1x8xf32>
    %28 = vector.shape_cast %27 : vector<1x1x8xf32> to vector<1x8xf32>
    %29 = vector.shape_cast %28 : vector<1x8xf32> to vector<1x1x8xf32>
    %30 = vector.broadcast %29 : vector<1x1x8xf32> to vector<4x8x8xf32>
    %31 = arith.addf %26, %30 : vector<4x8x8xf32>
    %cst_16 = arith.constant dense<0xFF800000> : vector<4x8xf32>
    %32 = vector.multi_reduction <maximumf>, %31, %cst_16 [2] : vector<4x8x8xf32> to vector<4x8xf32>
    %33 = vector.shape_cast %32 : vector<4x8xf32> to vector<4x8x1xf32>
    %34 = vector.broadcast %33 : vector<4x8x1xf32> to vector<4x8x8xf32>
    %35 = arith.subf %31, %34 : vector<4x8x8xf32>
    %36 = math.exp %35 : vector<4x8x8xf32>
    %cst_17 = arith.constant dense<0.000000e+00> : vector<4x8xf32>
    %37 = vector.multi_reduction <add>, %36, %cst_17 [2] : vector<4x8x8xf32> to vector<4x8xf32>
    %38 = vector.shape_cast %37 : vector<4x8xf32> to vector<4x8x1xf32>
    %39 = tpu.reciprocal %38 {approx = true} : vector<4x8x1xf32> -> vector<4x8x1xf32>
    %40 = vector.broadcast %39 : vector<4x8x1xf32> to vector<4x8x8xf32>
    %41 = arith.mulf %36, %40 : vector<4x8x8xf32>
    %42 = arith.truncf %41 : vector<4x8x8xf32> to vector<4x8x8xbf16>
    "tpu.trace_start"() <{level = 10 : i32, message = "hqk,hkd->hqd"}> : () -> ()
    %cst_18 = arith.constant dense<0.000000e+00> : vector<4x8x8xf32>
    %43 = tpu.matmul %42, %23, %cst_18 {dimension_numbers = #tpu.dot_dimension_numbers<[2], [1], [1], [2], [0, 0, 0, 1, 1, 2], [0], [0]>} : vector<4x8x8xbf16>, vector<4x8x8xbf16>, vector<4x8x8xf32> -> vector<4x8x8xf32>
    "tpu.trace_stop"() : () -> ()
    %44 = tpu.transpose %43, [1, 0, 2] : vector<4x8x8xf32> -> vector<8x4x8xf32>
    %45 = vector.shape_cast %44 : vector<8x4x8xf32> to vector<8x32xf32>
    %46 = arith.truncf %45 : vector<8x32xf32> to vector<8x32xbf16>
    %c0_19 = arith.constant 0 : index
    %c0_20 = arith.constant 0 : index
    %47 = vector.load %arg12[%c0_19, %c0_20] : memref<32x32xbf16, #tpu.memory_space<vmem>>, vector<32x32xbf16>
    %cst_21 = arith.constant dense<0.000000e+00> : vector<8x32xf32>
    %48 = tpu.matmul %46, %47, %cst_21 {dimension_numbers = #tpu.dot_dimension_numbers<[1], [0], [0], [1], [0, 0, 1, 1], [], []>} : vector<8x32xbf16>, vector<32x32xbf16>, vector<8x32xf32> -> vector<8x32xf32>
    %c0_22 = arith.constant 0 : index
    %c0_23 = arith.constant 0 : index
    %49 = vector.load %arg13[%c0_22, %c0_23] : memref<1x32xf32, #tpu.memory_space<vmem>>, vector<1x32xf32>
    %50 = vector.broadcast %49 : vector<1x32xf32> to vector<8x32xf32>
    %51 = arith.addf %48, %50 : vector<8x32xf32>
    %52 = arith.addf %7, %51 : vector<8x32xf32>
    %c0_24 = arith.constant 0 : index
    %c0_25 = arith.constant 0 : index
    %53 = vector.load %arg14[%c0_24, %c0_25] : memref<1x32xf32, #tpu.memory_space<vmem>>, vector<1x32xf32>
    %c0_26 = arith.constant 0 : index
    %c0_27 = arith.constant 0 : index
    %54 = vector.load %arg15[%c0_26, %c0_27] : memref<1x32xf32, #tpu.memory_space<vmem>>, vector<1x32xf32>
    %cst_28 = arith.constant dense<0.000000e+00> : vector<8xf32>
    %55 = vector.multi_reduction <add>, %52, %cst_28 [1] : vector<8x32xf32> to vector<8xf32>
    %56 = vector.shape_cast %55 : vector<8xf32> to vector<8x1xf32>
    %cst_29 = arith.constant 3.200000e+01 : f32
    %57 = vector.broadcast %cst_29 : f32 to vector<8x1xf32>
    %58 = arith.divf %56, %57 : vector<8x1xf32>
    %59 = vector.broadcast %58 : vector<8x1xf32> to vector<8x32xf32>
    %60 = arith.subf %52, %59 : vector<8x32xf32>
    %61 = arith.mulf %60, %60 : vector<8x32xf32>
    %cst_30 = arith.constant dense<0.000000e+00> : vector<8xf32>
    %62 = vector.multi_reduction <add>, %61, %cst_30 [1] : vector<8x32xf32> to vector<8xf32>
    %63 = vector.shape_cast %62 : vector<8xf32> to vector<8x1xf32>
    %cst_31 = arith.constant 3.100000e+01 : f32
    %64 = vector.broadcast %cst_31 : f32 to vector<8x1xf32>
    %65 = arith.divf %63, %64 : vector<8x1xf32>
    %66 = vector.broadcast %58 : vector<8x1xf32> to vector<8x32xf32>
    %67 = arith.subf %52, %66 : vector<8x32xf32>
    %68 = vector.broadcast %53 : vector<1x32xf32> to vector<8x32xf32>
    %69 = arith.mulf %68, %67 : vector<8x32xf32>
    %70 = math.sqrt %65 : vector<8x1xf32>
    %cst_32 = arith.constant 9.99999997E-7 : f32
    %71 = vector.broadcast %cst_32 : f32 to vector<8x1xf32>
    %72 = arith.addf %70, %71 : vector<8x1xf32>
    %73 = vector.broadcast %72 : vector<8x1xf32> to vector<8x32xf32>
    %74 = arith.divf %69, %73 : vector<8x32xf32>
    %75 = vector.broadcast %54 : vector<1x32xf32> to vector<8x32xf32>
    %76 = arith.addf %74, %75 : vector<8x32xf32>
    %77 = arith.truncf %76 : vector<8x32xf32> to vector<8x32xbf16>
    %c0_33 = arith.constant 0 : index
    %c0_34 = arith.constant 0 : index
    %78 = vector.load %arg16[%c0_33, %c0_34] : memref<32x128xbf16, #tpu.memory_space<vmem>>, vector<32x128xbf16>
    %cst_35 = arith.constant dense<0.000000e+00> : vector<8x128xf32>
    %79 = tpu.matmul %77, %78, %cst_35 {dimension_numbers = #tpu.dot_dimension_numbers<[1], [0], [0], [1], [0, 0, 1, 1], [], []>} : vector<8x32xbf16>, vector<32x128xbf16>, vector<8x128xf32> -> vector<8x128xf32>
    %c0_36 = arith.constant 0 : index
    %c0_37 = arith.constant 0 : index
    %80 = vector.load %arg17[%c0_36, %c0_37] : memref<1x128xf32, #tpu.memory_space<vmem>>, vector<1x128xf32>
    %81 = vector.broadcast %80 : vector<1x128xf32> to vector<8x128xf32>
    %82 = arith.addf %79, %81 : vector<8x128xf32>
    %cst_38 = arith.constant 5.000000e-01 : f32
    %83 = vector.broadcast %cst_38 : f32 to vector<8x128xf32>
    %84 = arith.mulf %83, %82 : vector<8x128xf32>
    %cst_39 = arith.constant 4.471500e-02 : f32
    %85 = vector.broadcast %cst_39 : f32 to vector<8x128xf32>
    %86 = arith.mulf %85, %82 : vector<8x128xf32>
    %87 = arith.mulf %86, %82 : vector<8x128xf32>
    %88 = arith.mulf %87, %82 : vector<8x128xf32>
    %89 = arith.addf %82, %88 : vector<8x128xf32>
    %cst_40 = arith.constant 0.797884583 : f32
    %90 = vector.broadcast %cst_40 : f32 to vector<8x128xf32>
    %91 = arith.mulf %90, %89 : vector<8x128xf32>
    %92 = math.tanh %91 : vector<8x128xf32>
    %cst_41 = arith.constant 1.000000e+00 : f32
    %93 = vector.broadcast %cst_41 : f32 to vector<8x128xf32>
    %94 = arith.addf %93, %92 : vector<8x128xf32>
    %95 = arith.mulf %84, %94 : vector<8x128xf32>
    %96 = arith.truncf %95 : vector<8x128xf32> to vector<8x128xbf16>
    %c0_42 = arith.constant 0 : index
    %c0_43 = arith.constant 0 : index
    %97 = vector.load %arg18[%c0_42, %c0_43] : memref<128x32xbf16, #tpu.memory_space<vmem>>, vector<128x32xbf16>
    %cst_44 = arith.constant dense<0.000000e+00> : vector<8x32xf32>
    %98 = tpu.matmul %96, %97, %cst_44 {dimension_numbers = #tpu.dot_dimension_numbers<[1], [0], [0], [1], [0, 0, 1, 1], [], []>} : vector<8x128xbf16>, vector<128x32xbf16>, vector<8x32xf32> -> vector<8x32xf32>
    %c0_45 = arith.constant 0 : index
    %c0_46 = arith.constant 0 : index
    %99 = vector.load %arg19[%c0_45, %c0_46] : memref<1x32xf32, #tpu.memory_space<vmem>>, vector<1x32xf32>
    %100 = vector.broadcast %99 : vector<1x32xf32> to vector<8x32xf32>
    %101 = arith.addf %98, %100 : vector<8x32xf32>
    %102 = arith.addf %52, %101 : vector<8x32xf32>
    %c0_47 = arith.constant 0 : index
    %c0_48 = arith.constant 0 : index
    %c0_49 = arith.constant 0 : index
    %103 = vector.load %arg20[%c0_47, %c0_48, %c0_49] : memref<1x8x32xf32, #tpu.memory_space<vmem>>, vector<1x8x32xf32>
    %104 = vector.shape_cast %103 : vector<1x8x32xf32> to vector<8x32xf32>
    %105 = vector.shape_cast %102 : vector<8x32xf32> to vector<1x8x32xf32>
    tpu.vector_store %arg20[%c0_47, %c0_48, %c0_49], %105 {strides = array<i32>} : memref<1x8x32xf32, #tpu.memory_space<vmem>>, vector<1x8x32xf32>,
    return
  }
  func.func @transform_0(%arg0: i32, %arg1: i32) -> (i32, i32, i32) {
    %c0_i32 = arith.constant 0 : i32
    %c0_i32_0 = arith.constant 0 : i32
    %c0_i32_1 = arith.constant 0 : i32
    return %arg0, %c0_i32, %c0_i32_0 : i32, i32, i32
  }
  func.func @transform_1(%arg0: i32, %arg1: i32) -> (i32, i32, i32) {
    %c0_i32 = arith.constant 0 : i32
    %c0_i32_0 = arith.constant 0 : i32
    %c0_i32_1 = arith.constant 0 : i32
    return %arg0, %c0_i32, %c0_i32_0 : i32, i32, i32
  }
  func.func @transform_2(%arg0: i32, %arg1: i32) -> (i32, i32) {
    %c0_i32 = arith.constant 0 : i32
    %c0_i32_0 = arith.constant 0 : i32
    %c0_i32_1 = arith.constant 0 : i32
    return %c0_i32, %c0_i32_0 : i32, i32
  }
  func.func @transform_3(%arg0: i32, %arg1: i32) -> (i32, i32) {
    %c0_i32 = arith.constant 0 : i32
    %c0_i32_0 = arith.constant 0 : i32
    %c0_i32_1 = arith.constant 0 : i32
    return %c0_i32, %c0_i32_0 : i32, i32
  }
  func.func @transform_4(%arg0: i32, %arg1: i32) -> (i32, i32) {
    %c0_i32 = arith.constant 0 : i32
    %c0_i32_0 = arith.constant 0 : i32
    %c0_i32_1 = arith.constant 0 : i32
    return %c0_i32, %c0_i32_0 : i32, i32
  }
  func.func @transform_5(%arg0: i32, %arg1: i32) -> (i32, i32) {
    %c0_i32 = arith.constant 0 : i32
    %c0_i32_0 = arith.constant 0 : i32
    %c0_i32_1 = arith.constant 0 : i32
    return %c0_i32, %c0_i32_0 : i32, i32
  }
  func.func @transform_6(%arg0: i32, %arg1: i32) -> (i32, i32) {
    %c0_i32 = arith.constant 0 : i32
    %c0_i32_0 = arith.constant 0 : i32
    %c0_i32_1 = arith.constant 0 : i32
    return %c0_i32, %c0_i32_0 : i32, i32
  }
  func.func @transform_7(%arg0: i32, %arg1: i32) -> (i32, i32) {
    %c0_i32 = arith.constant 0 : i32
    %c0_i32_0 = arith.constant 0 : i32
    %c0_i32_1 = arith.constant 0 : i32
    return %c0_i32, %c0_i32_0 : i32, i32
  }
  func.func @transform_8(%arg0: i32, %arg1: i32) -> (i32, i32) {
    %c0_i32 = arith.constant 0 : i32
    %c0_i32_0 = arith.constant 0 : i32
    %c0_i32_1 = arith.constant 0 : i32
    return %c0_i32, %c0_i32_0 : i32, i32
  }
  func.func @transform_9(%arg0: i32, %arg1: i32) -> (i32, i32) {
    %c0_i32 = arith.constant 0 : i32
    %c0_i32_0 = arith.constant 0 : i32
    %c0_i32_1 = arith.constant 0 : i32
    return %c0_i32, %c0_i32_0 : i32, i32
  }
  func.func @transform_10(%arg0: i32, %arg1: i32) -> (i32, i32) {
    %c0_i32 = arith.constant 0 : i32
    %c0_i32_0 = arith.constant 0 : i32
    %c0_i32_1 = arith.constant 0 : i32
    return %c0_i32, %c0_i32_0 : i32, i32
  }
  func.func @transform_11(%arg0: i32, %arg1: i32) -> (i32, i32) {
    %c0_i32 = arith.constant 0 : i32
    %c0_i32_0 = arith.constant 0 : i32
    %c0_i32_1 = arith.constant 0 : i32
    return %c0_i32, %c0_i32_0 : i32, i32
  }
  func.func @transform_12(%arg0: i32, %arg1: i32) -> (i32, i32) {
    %c0_i32 = arith.constant 0 : i32
    %c0_i32_0 = arith.constant 0 : i32
    %c0_i32_1 = arith.constant 0 : i32
    return %c0_i32, %c0_i32_0 : i32, i32
  }
  func.func @transform_13(%arg0: i32, %arg1: i32) -> (i32, i32) {
    %c0_i32 = arith.constant 0 : i32
    %c0_i32_0 = arith.constant 0 : i32
    %c0_i32_1 = arith.constant 0 : i32
    return %c0_i32, %c0_i32_0 : i32, i32
  }
  func.func @transform_14(%arg0: i32, %arg1: i32) -> (i32, i32) {
    %c0_i32 = arith.constant 0 : i32
    %c0_i32_0 = arith.constant 0 : i32
    %c0_i32_1 = arith.constant 0 : i32
    return %c0_i32, %c0_i32_0 : i32, i32
  }
  func.func @transform_15(%arg0: i32, %arg1: i32) -> (i32, i32) {
    %c0_i32 = arith.constant 0 : i32
    %c0_i32_0 = arith.constant 0 : i32
    %c0_i32_1 = arith.constant 0 : i32
    return %c0_i32, %c0_i32_0 : i32, i32
  }
  func.func @transform_16(%arg0: i32, %arg1: i32) -> (i32, i32) {
    %c0_i32 = arith.constant 0 : i32
    %c0_i32_0 = arith.constant 0 : i32
    %c0_i32_1 = arith.constant 0 : i32
    return %c0_i32, %c0_i32_0 : i32, i32
  }
  func.func @transform_17(%arg0: i32, %arg1: i32) -> (i32, i32) {
    %c0_i32 = arith.constant 0 : i32
    %c0_i32_0 = arith.constant 0 : i32
    %c0_i32_1 = arith.constant 0 : i32
    return %c0_i32, %c0_i32_0 : i32, i32
  }
  func.func @transform_18(%arg0: i32, %arg1: i32) -> (i32, i32, i32) {
    %c0_i32 = arith.constant 0 : i32
    %c0_i32_0 = arith.constant 0 : i32
    return %arg0, %arg1, %c0_i32 : i32, i32, i32
  }
}

</mosaic_0001>

<bundles_post_ra>
// kernel: tpu_custom_call.1
= control target key start
LH: loop header
LB: loop body
LE: loop exit
PB: predicated region body
PF: predicated region fallthrough
CT: control target
= control target key end

     0   :  { %s2826_s0 = inlined_call_operand.hbm [shape: f32[2,1,8], index: 0, kind: input, shape index: {}]   ;;  %s2827_s1 = inlined_call_operand.vmem [shape: f32[2,8,32], index: 1, kind: input, shape index: {}]   ;;  %s2828_s2 = inlined_call_operand.vmem [shape: f32[1,32], index: 2, kind: input, shape index: {}]   ;;  %s2829_s3 = inlined_call_operand.vmem [shape: f32[1,32], index: 3, kind: input, shape index: {}]   ;;  %s2830_s4 = inlined_call_operand.vmem [shape: bf16[32,32], index: 4, kind: input, shape index: {}]   ;;  %s2831_s5 = inlined_call_operand.vmem [shape: f32[1,32], index: 5, kind: input, shape index: {}]   ;;  %s2832_s6 = inlined_call_operand.vmem [shape: bf16[32,32], index: 6, kind: input, shape index: {}]   ;;  %s2833_s7 = inlined_call_operand.vmem [shape: f32[1,32], index: 7, kind: input, shape index: {}]   ;;  %s2834_s8 = inlined_call_operand.vmem [shape: bf16[32,32], index: 8, kind: input, shape index: {}]   ;;  %s2835_s9 = inlined_call_operand.vmem [shape: f32[1,32], index: 9, kind: input, shape index: {}]   ;;  %s2836_s10 = inlined_call_operand.vmem [shape: bf16[32,32], index: 10, kind: input, shape index: {}]   ;;  %s2837_s11 = inlined_call_operand.vmem [shape: f32[1,32], index: 11, kind: input, shape index: {}]   ;;  %s2838_s12 = inlined_call_operand.vmem [shape: f32[1,32], index: 12, kind: input, shape index: {}]   ;;  %s2839_s13 = inlined_call_operand.vmem [shape: f32[1,32], index: 13, kind: input, shape index: {}]   ;;  %s2840_s14 = inlined_call_operand.hbm [shape: bf16[32,128], index: 14, kind: input, shape index: {}]   ;;  %s2841_s15 = inlined_call_operand.vmem [shape: f32[1,128], index: 15, kind: input, shape index: {}]   ;;  %s2842_s16 = inlined_call_operand.vmem [shape: bf16[128,32], index: 16, kind: input, shape index: {}]   ;;  %s2843_s17 = inlined_call_operand.vmem [shape: f32[1,32], index: 17, kind: input, shape index: {}]   ;;  %s2844_s18 = inlined_call_operand.hbm [shape: f32[2,8,32], index: 18, kind: output, shape index: {}]  }
   0x1   :  { %2850 = sst [smem:[#allocation16_spill]] %s2826_s0 }
   0x2   :  { %2851 = sst [smem:[#allocation17_spill]] %s2827_s1 }
   0x3   :  { %2852 = sst [smem:[#allocation18_spill]] %s2828_s2 }
   0x4   :  { %2853 = sst [smem:[#allocation19_spill]] %s2838_s12 }
   0x5   :  { %2854 = sst [smem:[#allocation20_spill]] %s2839_s13 }
   0x6   :  { %2855 = sst [smem:[#allocation21_spill]] %s2840_s14 }
   0x7   :  { %2856 = sst [smem:[#allocation22_spill]] %s2841_s15 }
   0x8   :  { %2857 = sst [smem:[#allocation23_spill]] %s2842_s16 }
   0x9   :  { %2858 = sst [smem:[#allocation24_spill]] %s2843_s17 }
   0xa   :  { %2859 = sst [smem:[#allocation25_spill]] %s2844_s18 }
   0xb   :  { %23 = vsyncpa [#allocation6], 0 }
   0xc   :  { %25 = vsyncpa [#allocation6 + $0x1], 0 }
   0xd   :  { %26 = vsyncpa [#allocation9], 0 }
   0xe   :  { %27 = vsyncpa [#allocation7], 0 }
   0xf   :  { %29 = vsyncpa [#allocation7 + $0x1], 0  ;;  %s2383_s27 = smov 0   ;;  %s2385_s28 = smov 0  }
  0x10   :  { %s2387_s29 = smov 0   ;;  %s2389_s30 = smov 0  }
  0x11   :  { %s2391_s0 = smov 0   ;;  %s2393_s19 = smov 0  }
  0x12 LB: > { %2860 = sst [smem:[#allocation14_spill]] %s2253_s27  ;;  %s1884_s1 = sadd.s32 4294967295, %s2273_s19   ;;  %s2273_s19 = sphi %s2393_s19, %s35_s19   ;;  %s2269_s0 = sphi %s2391_s0, %s2884_s0   ;;  %s2265_s30 = sphi %s2389_s30, %s2883_s30   ;;  %s2261_s29 = sphi %s2387_s29, %s2882_s29   ;;  %s2257_s28 = sphi %s2385_s28, %s2881_s28   ;;  %s2253_s27 = sphi %s2383_s27, %s2880_s27  }
  0x13   : > { %p1886_p0 = scmp.ge.s32.totalorder %s2273_s19, 1  ;;  %p2415_p1 = scmp.eq.s32.totalorder %s1884_s1, 0 }
  0x14   : > { %p468_p2 = scmp.lt.s32.totalorder %s2273_s19, 3  ;;  %s2862_s14 = sld [smem:[#allocation21_spill]] }
  0x15   : > { %s2275_s24 = smov [#allocation8]   ;;  %p1888_p6 = scmp.ge.s32.totalorder %s2273_s19, 2 }
  0x16   : > { %p2423_p3 = pnand %p1886_p0, %p468_p2  ;;  %s517_s25 = sshll.u32 %s2275_s24, 4  ;;  %s518_s25 = int_to_ptr.vmem [resolvable:$true] %s517_s25 }
  0x17   : > { %s2276_s26 = smov 64   ;;  %s2277_s21 = smov 4  }
  0x18   : > { %p2008_p4 = pneg %p2423_p3  ;;  %s1885_s22 = sadd.s32 4294967294, %s2273_s19  }
  0x19   : > { %s54_s18 = sadd.s32 1, %s2261_s29  ;;  %p61_p8 = scmp.ne.s32.totalorder %s2261_s29, %s2257_s28 }
  0x1a   : > { %s515_s2 = sshll.u32 %s2862_s14, 4  ;;  %p2009_p5 = pnand %p2008_p4, %p2415_p1  ;;  %s516_s2 = int_to_ptr.hbm [resolvable:$true] %s515_s2 }
  0x1b   : > { %s47_s14 = sadd.s32 1, %s2269_s0  ;;  %p62_p9 = scmp.eq.s32.totalorder %s2273_s19, 0 }
  0x1c   : > { %2011 = dma.hbm_to_vmem [thread:$0]  (!%p2009_p5), %s516_s2, 256, %s518_s25, [#allocation9], %s2276_s26, %s2276_s26, %s2277_s21  }
  0x1d   : > { %p49_p7 = scmp.ge.s32.totalorder %s47_s14, 2  ;;  %p67_p10 = scmp.ne.s32.totalorder %s2257_s28, %s2253_s27 }
  0x1e   : > { %p2442_p11 = por %p62_p9, %p61_p8  ;;  %p455_p13 = scmp.eq.s32.totalorder %s1884_s1, 1 }
  0x1f   : > { %s2886_s14 = smov (%p49_p7, %s47_s14), 0  ;;  %p2448_p12 = por %p2415_p1, %p67_p10 }
  0x20   : > { %2864 = sst [smem:[#allocation15_spill]] %s2886_s14  ;;  %s51_s25 = ssub.s32 %s2269_s0, %s2886_s14 }
  0x21   : > { %p52_p0 = scmp.eq.s32.totalorder %s51_s25, 0  ;;  %p461_p2 = scmp.eq.s32.totalorder %s1885_s22, 1 }
  0x22   : > { %p2454_p4 = por %p455_p13, %p61_p8  ;;  %p2021_p5 = scmp.lt.s32.totalorder %s2273_s19, 2 }
  0x23   : > { %s2460_s21 = scalar_select %p52_p0, %s2261_s29, %s54_s18  }
  0x24   : > { %p2462_p7 = por %p461_p2, %p67_p10  ;;  %s540_s17 = sand.u32 1, %s2261_s29  }
  0x25   : > { %s2869_s12 = sld [smem:[#allocation16_spill]]  ;;  %s543_s14 = scalar_lea.vmem [#allocation5], %s540_s17 }
  0x26   : > { %s550_s1 = sshll.u32 %s543_s14, 4  ;;  %p2013_p8 = pnand %p2021_p5, %p2442_p11  ;;  %s551_s1 = int_to_ptr.vmem [resolvable:$true] %s550_s1 }
  0x27   : > { %s541_s22 = scalar_lea.sflag [#allocation6], %s540_s17  ;;  %s2476_s18 = sand.u32 (!%p2423_p3), 1, %s2257_s28  }
  0x28   : > { %s569_s13 = scalar_lea.sflag (!%p2423_p3), [#allocation6], %s2476_s18 }
  0x29   : > { %566 = sbr.rel (%p2423_p3) target bundleno = 2022 (0x7e6), region = 92 }
  0x2b   : > { %s546_s16 = scalar_lea.hbm %s2869_s12, %s2269_s0  ;;  %s571_s12 = scalar_lea.vmem (!%p2423_p3), [#allocation5], %s2476_s18 }
  0x2c   : > { %s548_s25 = sshll.u32 %s546_s16, 4  ;;  %s549_s25 = int_to_ptr.hbm [resolvable:$true] %s548_s25 }
  0x2d   : > { %2015 = dma.hbm_to_vmem [thread:$0]  (!%p2013_p8), %s549_s25, 16, %s551_s1, %s541_s22  }
  0x2e   : > { %2240 = dma.done.wait (%p2448_p12), %s569_s13, 16  }
  0x2f   : > { %2242 = vsyncadd (%p2448_p12), %s569_s13, 4294967280 }
  0x30   : > { %2244 = dma.done.wait (%p2415_p1), [#allocation9], 256  }
  0x31   : > { %2246 = vsyncadd (%p2415_p1), [#allocation9], 4294967040  ;;  %p633_p3 = scmp.lt.s32.totalorder %s2265_s30, 1  ;;  %s2870_s23 = sld [smem:[#allocation17_spill]]  ;;  %vm645_vm0 = vcmask 261120   ;;  %v2278_v2 = vmov 32.0  }
  0x32   : > { %2096 = vrcp.f32 %v2278_v2  ;;  %v2279_v14 = vmov 31.0   ;;  %v1983_v19 = vld [vmem:[%s2832_s6 + $0x8] sm:$0xff]  ;;  %v1982_v21 = vld [vmem:[%s2832_s6] sm:$0xff]  ;;  %s2871_s25 = sld [smem:[#allocation18_spill]]  ;;  %vm707_vm9 = vcmask 257024   ;;  %s2281_s20 = smov 120  }
  0x33   : > { %s634_s14 = scalar_select %p633_p3, %s2265_s30, 1  ;;  %2098 = vrcp.f32 %v2279_v14  ;;  %v1985_v20 = vld [vmem:[%s2834_s8 + $0x8] sm:$0xff]  ;;  %738 = vmatpush.bf16.msra.mxu0 %v1983_v19  ;;  %v1984_v22 = vld [vmem:[%s2834_s8] sm:$0xff]  ;;  %vm858_vm10 = vcmask 1047556   ;;  %vm1194_vm11 = vcmask 64512   ;;  %vm1334_vm12 = vcmask 1043456  }
  0x34   : > { %771 = vmatpush.bf16.msra.mxu2 %v1985_v20  ;;  %v1987_v32 = vld [vmem:[%s2830_s4 + $0x8] sm:$0xff]  ;;  %v1986_v34 = vld [vmem:[%s2830_s4] sm:$0xff]  ;;  %v2284_v20 = vmov 1934713408   ;;  %s2286_s22 = smov 16   ;;  %s2287_s13 = smov 8  }
  0x35   : > { %s1892_s15 = sshll.u32 %s634_s14, 3  ;;  %v2086_v51 = vld [vmem:[%s2829_s3] ss:$0 sm:$0xff]  ;;  %vm1532_vm13 = vcmask 130048   ;;  %vm1534_vm14 = vcmask 195584   ;;  %s2872_s1 = sld [smem:[#allocation23_spill]] }
  0x36   : > { %v2087_v57 = vld [vmem:[%s2833_s7] ss:$0 sm:$0xff]  ;;  %s2873_s14 = sld [smem:[#allocation19_spill]]  ;;  %s1891_s2 = sshll.u32 %s2476_s18, 3 }
  0x37   : > { %s2493_s24 = scalar_lea.vmem %s2870_s23, %s1892_s15  ;;  %739 = vmatpush.bf16.msra.mxu0 %v1982_v21  ;;  %v2088_v61 = vld [vmem:[%s2835_s9] ss:$0 sm:$0xff]  ;;  %s2280_s23 = smov 104   ;;  %v863_v21 = vunpack.c.l.s4 %v2284_v20 }
  0x38   : > { %v642_v0 = vld [vmem:[%s2493_s24] sm:$0xff]  ;;  %v2097_v3 = vpop.eup %2096  ;;  %772 = vmatpush.bf16.msra.mxu2 %v1984_v22  ;;  %s2874_s17 = sld [smem:[#allocation20_spill]] }
  0x39   : > { %v646_v1 = vsel %vm645_vm0, %v642_v0, 0.0  ;;  %v650_v4 = vmul.f32 32.0, %v2097_v3  ;;  %vm654_vm1 = vweird.f32 %v2097_v3  ;;  %v2099_v15 = vpop.eup %2098  ;;  %v2085_v44 = vld [vmem:[%s2871_s25] ss:$0 sm:$0xff]  ;;  %s2282_s25 = smov 112   ;;  %s2877_s16 = sld [smem:[#allocation25_spill]] }
  0x3a   : > { %647 = vadd.xlane.f32.xlu0 %v646_v1  ;;  %v663_v16 = vmul.f32 31.0, %v2099_v15  ;;  %vm667_vm2 = vweird.f32 %v2099_v15 }
  0x3b   : > { %v651_v5 = vsub.f32 1.0, %v650_v4  ;;  %v2089_v4 = vld [vmem:[%s2831_s5] ss:$0 sm:$0xff] }
  0x3c   : > { %v664_v17 = vsub.f32 1.0, %v663_v16  ;;  %820 = vmatpush.bf16.msrb.mxu2 %v1987_v32 }
  0x3d   : > { %v652_v6 = vmul.f32 %v2097_v3, %v651_v5 }
  0x3e   : > { %v665_v18 = vmul.f32 %v2099_v15, %v664_v17 }
  0x3f   : > { %v653_v7 = vadd.f32 %v2097_v3, %v652_v6 }
  0x40   : > { %v666_v23 = vadd.f32 %v2099_v15, %v665_v18  ;;  %821 = vmatpush.bf16.msrb.mxu2 %v1986_v34 }
  0x41   : > { %v2497_v8 = vsel %vm654_vm1, %v2097_v3, %v653_v7 }
  0x42   : > { %v2513_v24 = vsel %vm667_vm2, %v2099_v15, %v666_v23 }
  0xad   : > { %v648_v9 = vpop.xlane.xlu0 %647 }
  0xae   : > { %v656_v10 = vmul.f32 %v2497_v8, %v648_v9 }
  0xb0   : > { %v657_v11 = vsub.f32 %v642_v0, %v656_v10 }
  0xb2   : > { %v658_v12 = vmul.f32 %v657_v11, %v657_v11  ;;  %v673_v49 = vmul.f32 %v2085_v44, %v657_v11 }
  0xb4   : > { %v659_v13 = vsel %vm645_vm0, %v658_v12, 0.0  ;;  %v2283_v12 = vmov 1983009808  }
  0xb5   : > { %660 = vadd.xlane.f32.xlu0 %v659_v13  ;;  %v849_v13 = vunpack.c.l.s4 %v2283_v12 }
  0xb7   : > { %v2549_v17 = vunpack.c.0.s8 %v849_v13 }
 0x128   : > { %v661_v25 = vpop.xlane.xlu0 %660 }
 0x129   : > { %v669_v26 = vmul.f32 %v2513_v24, %v661_v25 }
 0x12b   : > { %2100 = vrsqrt.f32 %v669_v26  ;;  %vm681_vm3 = vcmp.eq.f32.partialorder %v669_v26, inf  ;;  %v684_v36 = vand.u32 2147483648, %v669_v26  ;;  %vm683_vm4 = vcmp.eq.f32.partialorder %v669_v26, 0.0 }
 0x131   : > { %v2101_v27 = vpop.eup %2100 }
 0x132   : > { %v675_v28 = vmul.f32 %v2101_v27, %v669_v26 }
 0x134   : > { %v676_v29 = vmul.f32 %v2101_v27, %v675_v28 }
 0x136   : > { %v677_v30 = vmul.f32 0.5, %v676_v29 }
 0x138   : > { %v678_v31 = vsub.f32 1.5, %v677_v30 }
 0x13a   : > { %v679_v33 = vmul.f32 %v2101_v27, %v678_v31  ;;  %v2553_v31 = vunpack.c.0.s8 %v863_v21 }
 0x13c   : > { %v680_v35 = vmul.f32 %v679_v33, %v669_v26 }
 0x13e   : > { %v682_v37 = vsel %vm681_vm3, %v669_v26, %v680_v35 }
 0x13f   : > { %v685_v38 = vsel %vm683_vm4, %v684_v36, %v682_v37 }
 0x140   : > { %v686_v39 = vadd.f32 1e-06, %v685_v38 }
 0x142   : > { %2102 = vrcp.f32 %v686_v39  ;;  %v698_v43 = vand.u32 2147483648, %v686_v39  ;;  %v696_v46 = vand.u32 2147483647, %v686_v39  ;;  %vm692_vm6 = vweird.f32 %v686_v39 }
 0x144   : > { %v699_v48 = vor.u32 1.1754944e-38, %v698_v43  ;;  %vm697_vm8 = vcmp.eq.f32.partialorder %v696_v46, 8.507059e+37 }
 0x148   : > { %v2103_v40 = vpop.eup %2102 }
 0x149   : > { %v688_v41 = vmul.f32 %v2103_v40, %v686_v39  ;;  %vm693_vm5 = vweird.f32 %v2103_v40 }
 0x14a   : > { %vm694_vm7 = vmor %vm692_vm6, %vm693_vm5 }
 0x14b   : > { %v689_v42 = vsub.f32 1.0, %v688_v41 }
 0x14d   : > { %v690_v45 = vmul.f32 %v2103_v40, %v689_v42 }
 0x14f   : > { %v691_v47 = vadd.f32 %v2103_v40, %v690_v45 }
 0x151   : > { %v695_v50 = vsel %vm694_vm7, %v2103_v40, %v691_v47 }
 0x152   : > { %v700_v52 = vsel %vm697_vm8, %v699_v48, %v695_v50 }
 0x153   : > { %v701_v53 = vmul.f32 %v700_v52, %v673_v49 }
 0x155   : > { %v705_v54 = vadd.f32 %v2086_v51, %v701_v53 }
 0x157   : > { %v706_v55 = vpack.c.bf16 %v705_v54, %v705_v54 }
 0x159   : > { %708 = vst.msk [vmem:[#allocation2] sm:$0xf] %vm707_vm9, %v706_v55  ;;  %1901 = vmatmul.msk.bf16.vlgmr.msra.gmra.mxu0 %vm645_vm0, %v706_v55  ;;  %1910 = vmatmul.msk.bf16.vlgmr.msra.gmra.mxu2 %vm645_vm0, %v706_v55 }
 0x160   : > { %v789_v56 = vld [vmem:[#allocation2] sm:$0xf] }
 0x169   : > { %1919 = vmatmul.msk.bf16.vlgmr.msrb.gmra.mxu2 %vm645_vm0, %v789_v56 }
 0x1d6   : > { %v741_v58 = vpop.f32.mrf.mxu0 }
 0x1d7   : > { %v742_v59 = vadd.f32 %v2087_v57, %v741_v58 }
 0x1d9   : > { %v778_v60 = vpack.c.bf16 %v742_v59, %v742_v59 }
 0x1db   : > { %779 = vst.msk [vmem:[#allocation3] sm:$0xf] %vm707_vm9, %v778_v60 }
 0x1dc   : > { %v774_v62 = vpop.f32.mrf.mxu2 }
 0x1dd   : > { %v775_v63 = vadd.f32 %v2088_v61, %v774_v62 }
 0x1de   : > { %v743_v0 = vpop.f32.mrf.mxu0 }
 0x1df   : > { %v780_v1 = vpack.c.bf16 %v775_v63, %v775_v63 }
 0x1e1   : > { %781 = vst.msk [vmem:[#allocation4] sm:$0xf] %vm707_vm9, %v780_v1 }
 0x1e2   : > { %v950_v2 = vld [vmem:[#allocation3] sm:$0xf] }
 0x1e3   : > { %956 = vrot.lane.b32.xlu2 %v950_v2, %s2280_s23  ;;  %952 = vrot.lane.b32.xlu1 %v950_v2, %s2281_s20  ;;  %v961_v16 = vshrl.u32 %v950_v2, 16 }
 0x1e4   : > { %v776_v3 = vpop.f32.mrf.mxu2 }
 0x1eb   : > { %954 = vrot.lane.b32.xlu1 %v950_v2, %s2282_s25 }
 0x1ec   : > { %v823_v5 = vpop.f32.mrf.mxu2 }
 0x1ed   : > { %v824_v6 = vadd.f32 %v2089_v4, %v823_v5 }
 0x1ef   : > { %v827_v7 = vpack.c.bf16 %v824_v6, %v824_v6 }
 0x1f1   : > { %831 = vrot.lane.b32.xlu0 %v827_v7, %s2282_s25  ;;  %829 = vrot.lane.b32.xlu2 %v827_v7, %s2281_s20  ;;  %v838_v30 = vshrl.u32 %v827_v7, 16 }
 0x1f3   : > { %833 = vrot.lane.b32.xlu1 %v827_v7, %s2280_s23 }
 0x1f4   : > { %v825_v9 = vpop.f32.mrf.mxu2 }
 0x23d   : > { %v957_v10 = vpop.permute.xlu2 %956 }
 0x23e   : > { %v968_v26 = vshrl.u32 %v957_v10, 16 }
 0x24b   : > { %v830_v18 = vpop.permute.xlu2 %829 }
 0x24c   : > { %v839_v23 = vshrl.u32 %v830_v18, 16  ;;  %v837_v32 = vpack.i.b16 %v830_v18, %v827_v7 }
 0x24e   : > { %v840_v36 = vpack.i.b16 %v839_v23, %v838_v30  ;;  %v851_v43 = vperm.slane %v837_v32, %v2549_v17 }
 0x250   : > { %v878_v47 = vperm.slane %v840_v36, %v2549_v17  ;;  %v860_v60 = vrot.slane %v851_v43, 4 }
 0x252   : > { %v886_v0 = vrot.slane %v878_v47, 4 }
 0x255   : > { %v953_v11 = vpop.permute.xlu1 %952 }
 0x256   : > { %v962_v14 = vshrl.u32 %v953_v11, 16  ;;  %v960_v15 = vpack.i.b16 %v953_v11, %v950_v2 }
 0x258   : > { %v963_v19 = vpack.i.b16 %v962_v14, %v961_v16  ;;  %v974_v22 = vperm.slane %v960_v15, %v2549_v17 }
 0x25a   : > { %v1000_v27 = vperm.slane %v963_v19, %v2549_v17  ;;  %v982_v33 = vrot.slane %v974_v22, 4 }
 0x25c   : > { %v1008_v37 = vrot.slane %v1000_v27, 4 }
 0x25d   : > { %v955_v25 = vpop.permute.xlu1 %954 }
 0x25e   : > { %v966_v28 = vpack.i.b16 %v957_v10, %v955_v25  ;;  %v967_v29 = vshrl.u32 %v955_v25, 16 }
 0x260   : > { %v969_v34 = vpack.i.b16 %v968_v26, %v967_v29  ;;  %v979_v35 = vperm.slane %v966_v28, %v2549_v17 }
 0x262   : > { %v980_v38 = vrot.slane %v979_v35, 4  ;;  %v983_v39 = vsel %vm858_vm10, %v979_v35, %v982_v33  ;;  %v1005_v40 = vperm.slane %v969_v34, %v2549_v17 }
 0x263   : > { %v991_v41 = vperm.slane %v983_v39, %v2553_v31  ;;  %v832_v42 = vpop.permute.xlu0 %831 }
 0x264   : > { %v981_v44 = vsel %vm858_vm10, %v980_v38, %v974_v22  ;;  %v1006_v45 = vrot.slane %v1005_v40, 4  ;;  %v1009_v46 = vsel %vm858_vm10, %v1005_v40, %v1008_v37  ;;  %v844_v53 = vshrl.u32 %v832_v42, 16 }
 0x265   : > { %v987_v48 = vperm.slane %v981_v44, %v2553_v31  ;;  %v994_v49 = vrot.slane %v991_v41, 4  ;;  %v1017_v50 = vperm.slane %v1009_v46, %v2553_v31  ;;  %v834_v51 = vpop.permute.xlu1 %833 }
 0x266   : > { %v1007_v52 = vsel %vm858_vm10, %v1006_v45, %v1000_v27  ;;  %v843_v54 = vpack.i.b16 %v834_v51, %v832_v42  ;;  %v845_v55 = vshrl.u32 %v834_v51, 16 }
 0x267   : > { %v992_v56 = vrot.slane %v987_v48, 4  ;;  %v995_v57 = vsel %vm858_vm10, 0, %v994_v49  ;;  %v1013_v58 = vperm.slane %v1007_v52, %v2553_v31  ;;  %v1020_v59 = vrot.slane %v1017_v50, 4 }
 0x268   : > { %v1027_v61 = vrot.slane %v995_v57, 4  ;;  %v846_v62 = vpack.i.b16 %v845_v55, %v844_v53  ;;  %v856_v63 = vperm.slane %v843_v54, %v2549_v17  ;;  %v1022_v11 = vsel %vm858_vm10, %v994_v49, %v987_v48 }
 0x269   : > { %v993_v1 = vsel %vm858_vm10, 0, %v992_v56  ;;  %v1018_v2 = vrot.slane %v1013_v58, 4  ;;  %v1021_v3 = vsel %vm858_vm10, 0, %v1020_v59  ;;  %v1041_v21 = vsel %vm858_vm10, %v1020_v59, %v1013_v58 }
 0x26a   : > { %v1046_v4 = vrot.slane %v1021_v3, 4  ;;  %v857_v5 = vrot.slane %v856_v63, 4  ;;  %v861_v6 = vsel %vm858_vm10, %v856_v63, %v860_v60  ;;  %v883_v7 = vperm.slane %v846_v62, %v2549_v17 }
 0x26b   : > { %v869_v9 = vperm.slane %v861_v6, %v2553_v31  ;;  %v1019_v10 = vsel %vm858_vm10, 0, %v1018_v2  ;;  %v1028_v12 = vsel %vm858_vm10, %v1027_v61, %v993_v1  ;;  %v1026_v23 = vperm.slane %v1022_v11, %v2549_v17 }
 0x26c   : > { %v859_v13 = vsel %vm858_vm10, %v857_v5, %v851_v43  ;;  %v884_v14 = vrot.slane %v883_v7, 4  ;;  %v887_v15 = vsel %vm858_vm10, %v883_v7, %v886_v0  ;;  %v1032_v16 = vperm.slane %v1028_v12, %v2549_v17 }
 0x26d   : > { %v865_v18 = vperm.slane %v859_v13, %v2553_v31  ;;  %v872_v19 = vrot.slane %v869_v9, 4  ;;  %v895_v20 = vperm.slane %v887_v15, %v2553_v31  ;;  %v1047_v26 = vsel %vm858_vm10, %v1046_v4, %v1019_v10 }
 0x26e   : > { %v885_v22 = vsel %vm858_vm10, %v884_v14, %v878_v47  ;;  %v1033_v25 = vrot.slane %v1032_v16, 4  ;;  %v1045_v34 = vperm.slane %v1041_v21, %v2549_v17  ;;  %v1051_v35 = vperm.slane %v1047_v26, %v2549_v17  ;;  %v2090_v26 = vld [vmem:[%s571_s12] ss:$0 sm:$0xff]  ;;  %s2285_s12 = smov 24  }
 0x26f   : > { %v870_v27 = vrot.slane %v865_v18, 4  ;;  %v873_v28 = vsel %vm858_vm10, 0, %v872_v19  ;;  %v891_v29 = vperm.slane %v885_v22, %v2553_v31  ;;  %v898_v30 = vrot.slane %v895_v20, 4 }
 0x270   : > { %v905_v32 = vrot.slane %v873_v28, 4  ;;  %v1034_v33 = vsel %vm858_vm10, %v1033_v25, %v1026_v23  ;;  %v900_v40 = vsel %vm858_vm10, %v872_v19, %v865_v18  ;;  %v1052_v42 = vrot.slane %v1051_v35, 4 }
 0x271   : > { %v871_v36 = vsel %vm858_vm10, 0, %v870_v27  ;;  %v896_v37 = vrot.slane %v891_v29, 4  ;;  %v899_v38 = vsel %vm858_vm10, 0, %v898_v30  ;;  %v1038_v39 = vperm.slane %v1034_v33, %v2553_v31 }
 0x272   : > { %v924_v41 = vrot.slane %v899_v38, 4  ;;  %v906_v43 = vsel %vm858_vm10, %v905_v32, %v871_v36  ;;  %v1053_v47 = vsel %vm858_vm10, %v1052_v42, %v1045_v34  ;;  %v904_v50 = vperm.slane %v900_v40, %v2549_v17 }
 0x273   : > { %v897_v44 = vsel %vm858_vm10, 0, %v896_v37  ;;  %v1039_v45 = vrot.slane %v1038_v39, 4  ;;  %v910_v46 = vperm.slane %v906_v43, %v2549_v17  ;;  %v1057_v49 = vperm.slane %v1053_v47, %v2553_v31 }
 0x274   : > { %v925_v48 = vsel %vm858_vm10, %v924_v41, %v897_v44  ;;  %v919_v52 = vsel %vm858_vm10, %v898_v30, %v891_v29  ;;  %v1063_v53 = vshrl.u32 %v1038_v39, 16 }
 0x275   : > { %v911_v51 = vrot.slane %v910_v46, 4  ;;  %v1040_v54 = vsel %vm858_vm10, 0, %v1039_v45  ;;  %v929_v55 = vperm.slane %v925_v48, %v2549_v17  ;;  %v1062_v56 = vpack.i.b16 %v1057_v49, %v1038_v39  ;;  %v1072_v48 = vld [vmem:[#allocation4] sm:$0xf] }
 0x276   : > { %v1064_v57 = vshrl.u32 %v1057_v49, 16  ;;  %v1058_v58 = vrot.slane %v1057_v49, 4  ;;  %v923_v61 = vperm.slane %v919_v52, %v2549_v17  ;;  %v1069_v3 = vshrl.u32 %v1040_v54, 16 }
 0x277   : > { %v912_v59 = vsel %vm858_vm10, %v911_v51, %v904_v50  ;;  %v930_v62 = vrot.slane %v929_v55, 4  ;;  %v1199_v63 = vsel %vm1194_vm11, %v1062_v56, 0 }
 0x278   : > { %v916_v60 = vperm.slane %v912_v59, %v2553_v31  ;;  %v1065_v0 = vpack.i.b16 %v1064_v57, %v1063_v53  ;;  %v1059_v1 = vsel %vm858_vm10, 0, %v1058_v58  ;;  %1208 = vmatpush.bf16.xpose.msra.mxu3 %v1199_v63 }
 0x279   : > { %v1068_v2 = vpack.i.b16 %v1059_v1, %v1040_v54  ;;  %v1070_v4 = vshrl.u32 %v1059_v1, 16  ;;  %v931_v5 = vsel %vm858_vm10, %v930_v62, %v923_v61 }
 0x27a   : > { %v1218_v6 = vsel %vm1194_vm11, %v1065_v0, 0  ;;  %v935_v7 = vperm.slane %v931_v5, %v2553_v31  ;;  %v917_v9 = vrot.slane %v916_v60, 4  ;;  %v941_v12 = vshrl.u32 %v916_v60, 16 }
 0x27b   : > { %1227 = vmatpush.bf16.xpose.msrb.mxu0 %v1218_v6  ;;  %v1237_v10 = vsel %vm1194_vm11, %v1068_v2, 0  ;;  %v1071_v11 = vpack.i.b16 %v1070_v4, %v1069_v3  ;;  %v1083_v6 = vshrl.u32 %v1072_v48, 16 }
 0x27c   : > { %1246 = vmatpush.bf16.xpose.msra.mxu1 %v1237_v10  ;;  %v940_v13 = vpack.i.b16 %v935_v7, %v916_v60  ;;  %v942_v14 = vshrl.u32 %v935_v7, 16  ;;  %v918_v15 = vsel %vm858_vm10, 0, %v917_v9  ;;  %v936_v16 = vrot.slane %v935_v7, 4 }
 0x27d   : > { %v1256_v18 = vsel %vm1194_vm11, %v1071_v11, 0  ;;  %v947_v22 = vshrl.u32 %v918_v15, 16 }
 0x27e   : > { %1265 = vmatpush.bf16.xpose.msra.mxu2 %v1256_v18  ;;  %v943_v19 = vpack.i.b16 %v942_v14, %v941_v12  ;;  %v937_v20 = vsel %vm858_vm10, 0, %v936_v16 }
 0x27f   : > { %v946_v21 = vpack.i.b16 %v937_v20, %v918_v15  ;;  %v948_v23 = vshrl.u32 %v937_v20, 16  ;;  %1920 = vmatmul.msk.bf16.vlgmr.msra.gmra.mxu3 %vm1194_vm11, %v940_v13 }
 0x281   : > { %v949_v25 = vpack.i.b16 %v948_v23, %v947_v22 }
 0x282   : > { %1921 = vmatmul.msk.bf16.vlgmr.msrb.gmra.mxu0 %vm1194_vm11, %v943_v19 }
 0x283   : > { %1922 = vmatmul.msk.bf16.vlgmr.msra.gmra.mxu1 %vm1194_vm11, %v946_v21 }
 0x285   : > { %1923 = vmatmul.msk.bf16.vlgmr.msra.gmra.mxu2 %vm1194_vm11, %v949_v25 }
 0x2ff   : > { %v1229_v27 = vpop.f32.mrf.mxu0 }
 0x300   : > { %v1272_v28 = vmul.f32 0.35355338, %v1229_v27  ;;  %v1248_v29 = vpop.f32.mrf.mxu1 }
 0x301   : > { %v1273_v30 = vmul.f32 0.35355338, %v1248_v29 }
 0x302   : > { %v1280_v32 = vadd.f32 %v2090_v26, %v1272_v28  ;;  %v1210_v33 = vpop.f32.mrf.mxu3 }
 0x303   : > { %v1281_v34 = vadd.f32 %v2090_v26, %v1273_v30  ;;  %v1271_v35 = vmul.f32 0.35355338, %v1210_v33 }
 0x304   : > { %v1286_v36 = vsel %vm1194_vm11, %v1280_v32, -inf }
 0x305   : > { %1287 = vmax.xlane.f32.xlu2 %v1286_v36  ;;  %v1289_v37 = vsel %vm1194_vm11, %v1281_v34, -inf  ;;  %v1279_v41 = vadd.f32 %v2090_v26, %v1271_v35 }
 0x306   : > { %1290 = vmax.xlane.f32.xlu0 %v1289_v37 }
 0x307   : > { %v1231_v38 = vpop.f32.mrf.mxu0  ;;  %v1283_v45 = vsel %vm1194_vm11, %v1279_v41, -inf }
 0x308   : > { %v1250_v39 = vpop.f32.mrf.mxu1  ;;  %v1267_v40 = vpop.f32.mrf.mxu2 }
 0x309   : > { %v1274_v42 = vmul.f32 0.35355338, %v1267_v40 }
 0x30a   : > { %v1212_v43 = vpop.f32.mrf.mxu3 }
 0x30b   : > { %v1282_v44 = vadd.f32 %v2090_v26, %v1274_v42 }
 0x30d   : > { %1284 = vmax.xlane.f32.xlu2 %v1283_v45  ;;  %v1292_v46 = vsel %vm1194_vm11, %v1282_v44, -inf }
 0x30e   : > { %1293 = vmax.xlane.f32.xlu1 %v1292_v46 }
 0x310   : > { %v1269_v47 = vpop.f32.mrf.mxu2 }
 0x31a   : > { %1078 = vrot.lane.b32.xlu0 %v1072_v48, %s2280_s23  ;;  %s632_s23 = scalar_lea.vmem [#allocation10], %s1891_s2  ;;  %s2207_s2 = scalar_lea.hbm %s2877_s16, 16 }
 0x325   : > { %1074 = vrot.lane.b32.xlu2 %v1072_v48, %s2281_s20  ;;  %s1780_s20 = sshll.u32 %s632_s23, 4  ;;  %s1781_s20 = int_to_ptr.vmem [resolvable:$true] %s1780_s20 }
 0x327   : > { %1076 = vrot.lane.b32.xlu1 %v1072_v48, %s2282_s25  ;;  %s1979_s25 = sshll.u32 %s2265_s30, 3  ;;  %s1767_s30 = scalar_lea.sflag [#allocation7], %s2476_s18 }
 0x378   : > { %v1288_v49 = vpop.xlane.xlu2 %1287 }
 0x379   : > { %v1291_v50 = vpop.xlane.xlu0 %1290  ;;  %v1296_v57 = vsub.f32 %v1280_v32, %v1288_v49 }
 0x37a   : > { %v1297_v51 = vsub.f32 %v1281_v34, %v1291_v50 }
 0x37b   : > { %v1301_v62 = vmul.f32 1.442695, %v1296_v57 }
 0x37c   : > { %v1303_v52 = vmul.f32 1.442695, %v1297_v51 }
 0x37e   : > { %2104 = vpow2.f32 %v1303_v52 }
 0x380   : > { %v1285_v53 = vpop.xlane.xlu2 %1284 }
 0x381   : > { %v1295_v54 = vsub.f32 %v1279_v41, %v1285_v53  ;;  %v1294_v55 = vpop.xlane.xlu1 %1293 }
 0x382   : > { %v1298_v56 = vsub.f32 %v1282_v44, %v1294_v55 }
 0x383   : > { %v1299_v58 = vmul.f32 1.442695, %v1295_v54 }
 0x384   : > { %v2630_v59 = vpop.eup %2104  ;;  %v1305_v60 = vmul.f32 1.442695, %v1298_v56 }
 0x385   : > { %2106 = vpow2.f32 %v1299_v58  ;;  %v1313_v61 = vsel %vm1194_vm11, %v2630_v59, 0.0 }
 0x386   : > { %2108 = vpow2.f32 %v1305_v60  ;;  %1314 = vadd.xlane.f32.xlu0 %v1313_v61 }
 0x387   : > { %2110 = vpow2.f32 %v1301_v62 }
 0x388   : > { %v1075_v3 = vpop.permute.xlu2 %1074 }
 0x389   : > { %v1084_v5 = vshrl.u32 %v1075_v3, 16  ;;  %v1082_v7 = vpack.i.b16 %v1075_v3, %v1072_v48 }
 0x38b   : > { %v2634_v63 = vpop.eup %2106  ;;  %v1085_v10 = vpack.i.b16 %v1084_v5, %v1083_v6  ;;  %v1096_v12 = vperm.slane %v1082_v7, %v2549_v17 }
 0x38c   : > { %v2636_v0 = vpop.eup %2108  ;;  %v1307_v1 = vsel %vm1194_vm11, %v2634_v63, 0.0  ;;  %v1079_v11 = vpop.permute.xlu0 %1078 }
 0x38d   : > { %1308 = vadd.xlane.f32.xlu2 %v1307_v1  ;;  %v1316_v2 = vsel %vm1194_vm11, %v2636_v0, 0.0  ;;  %v2642_v4 = vpop.eup %2110  ;;  %v1122_v14 = vperm.slane %v1085_v10, %v2549_v17  ;;  %v1090_v15 = vshrl.u32 %v1079_v11, 16  ;;  %v1104_v19 = vrot.slane %v1096_v12, 4 }
 0x38e   : > { %1317 = vadd.xlane.f32.xlu1 %v1316_v2  ;;  %v1310_v9 = vsel %vm1194_vm11, %v2642_v4, 0.0 }
 0x38f   : > { %v1130_v22 = vrot.slane %v1122_v14, 4 }
 0x395   : > { %1311 = vadd.xlane.f32.xlu2 %v1310_v9 }
 0x399   : > { %v1077_v13 = vpop.permute.xlu1 %1076 }
 0x39a   : > { %v1088_v16 = vpack.i.b16 %v1079_v11, %v1077_v13  ;;  %v1089_v18 = vshrl.u32 %v1077_v13, 16 }
 0x39c   : > { %v1091_v20 = vpack.i.b16 %v1090_v15, %v1089_v18  ;;  %v1101_v21 = vperm.slane %v1088_v16, %v2549_v17 }
 0x39e   : > { %v1102_v23 = vrot.slane %v1101_v21, 4  ;;  %v1105_v25 = vsel %vm858_vm10, %v1101_v21, %v1104_v19  ;;  %v1127_v26 = vperm.slane %v1091_v20, %v2549_v17 }
 0x39f   : > { %v1113_v27 = vperm.slane %v1105_v25, %v2553_v31 }
 0x3a0   : > { %v1103_v28 = vsel %vm858_vm10, %v1102_v23, %v1096_v12  ;;  %v1128_v29 = vrot.slane %v1127_v26, 4  ;;  %v1131_v30 = vsel %vm858_vm10, %v1127_v26, %v1130_v22 }
 0x3a1   : > { %v1109_v32 = vperm.slane %v1103_v28, %v2553_v31  ;;  %v1116_v33 = vrot.slane %v1113_v27, 4  ;;  %v1139_v34 = vperm.slane %v1131_v30, %v2553_v31 }
 0x3a2   : > { %v1129_v35 = vsel %vm858_vm10, %v1128_v29, %v1122_v14 }
 0x3a3   : > { %v1114_v36 = vrot.slane %v1109_v32, 4  ;;  %v1117_v37 = vsel %vm858_vm10, 0, %v1116_v33  ;;  %v1135_v38 = vperm.slane %v1129_v35, %v2553_v31  ;;  %v1142_v39 = vrot.slane %v1139_v34, 4 }
 0x3a4   : > { %v1149_v40 = vrot.slane %v1117_v37, 4  ;;  %v1144_v45 = vsel %vm858_vm10, %v1116_v33, %v1109_v32 }
 0x3a5   : > { %v1115_v41 = vsel %vm858_vm10, 0, %v1114_v36  ;;  %v1140_v42 = vrot.slane %v1135_v38, 4  ;;  %v1143_v43 = vsel %vm858_vm10, 0, %v1142_v39  ;;  %v1163_v49 = vsel %vm858_vm10, %v1142_v39, %v1135_v38 }
 0x3a6   : > { %v1168_v44 = vrot.slane %v1143_v43, 4  ;;  %v1150_v46 = vsel %vm858_vm10, %v1149_v40, %v1115_v41  ;;  %v1148_v51 = vperm.slane %v1144_v45, %v2549_v17  ;;  %v1167_v55 = vperm.slane %v1163_v49, %v2549_v17 }
 0x3a7   : > { %v1141_v47 = vsel %vm858_vm10, 0, %v1140_v42  ;;  %v1154_v48 = vperm.slane %v1150_v46, %v2549_v17 }
 0x3a8   : > { %v1169_v50 = vsel %vm858_vm10, %v1168_v44, %v1141_v47 }
 0x3a9   : > { %v1155_v52 = vrot.slane %v1154_v48, 4  ;;  %v1173_v53 = vperm.slane %v1169_v50, %v2549_v17 }
 0x3ab   : > { %v1156_v54 = vsel %vm858_vm10, %v1155_v52, %v1148_v51  ;;  %v1174_v56 = vrot.slane %v1173_v53, 4 }
 0x3ac   : > { %v1160_v57 = vperm.slane %v1156_v54, %v2553_v31 }
 0x3ad   : > { %v1175_v58 = vsel %vm858_vm10, %v1174_v56, %v1167_v55 }
 0x3ae   : > { %v1179_v60 = vperm.slane %v1175_v58, %v2553_v31  ;;  %v1161_v61 = vrot.slane %v1160_v57, 4  ;;  %v1185_v62 = vshrl.u32 %v1160_v57, 16 }
 0x3b0   : > { %v1184_v1 = vpack.i.b16 %v1179_v60, %v1160_v57  ;;  %v1186_v2 = vshrl.u32 %v1179_v60, 16  ;;  %v1162_v3 = vsel %vm858_vm10, 0, %v1161_v61  ;;  %v1180_v5 = vrot.slane %v1179_v60, 4 }
 0x3b1   : > { %v1191_v11 = vshrl.u32 %v1162_v3, 16 }
 0x3b2   : > { %v1336_v6 = vsel %vm1334_vm12, %v1184_v1, 0  ;;  %v1187_v7 = vpack.i.b16 %v1186_v2, %v1185_v62  ;;  %v1181_v9 = vsel %vm858_vm10, 0, %v1180_v5 }
 0x3b3   : > { %1345 = vmatpush.bf16.msrb.mxu3 %v1336_v6  ;;  %v1190_v10 = vpack.i.b16 %v1181_v9, %v1162_v3  ;;  %v1192_v12 = vshrl.u32 %v1181_v9, 16 }
 0x3b4   : > { %v1355_v13 = vsel %vm1334_vm12, %v1187_v7, 0 }
 0x3b5   : > { %1364 = vmatpush.bf16.msra.mxu0 %v1355_v13  ;;  %v1374_v14 = vsel %vm1334_vm12, %v1190_v10, 0  ;;  %v1193_v15 = vpack.i.b16 %v1192_v12, %v1191_v11 }
 0x3b6   : > { %1383 = vmatpush.bf16.msrb.mxu1 %v1374_v14 }
 0x3b7   : > { %v1393_v16 = vsel %vm1334_vm12, %v1193_v15, 0 }
 0x3b8   : > { %1402 = vmatpush.bf16.msrb.mxu2 %v1393_v16 }
 0x3f9   : > { %v1315_v18 = vpop.xlane.xlu0 %1314 }
 0x3fa   : > { %2112 = vrcp.f32 %v1315_v18 }
 0x400   : > { %v2113_v19 = vpop.eup %2112  ;;  %v1309_v20 = vpop.xlane.xlu2 %1308 }
 0x401   : > { %v1325_v21 = vmul.f32 %v2113_v19, %v2630_v59  ;;  %2114 = vrcp.f32 %v1309_v20  ;;  %v1318_v22 = vpop.xlane.xlu1 %1317 }
 0x402   : > { %2116 = vrcp.f32 %v1318_v22 }
 0x403   : > { %v1329_v23 = vpack.c.bf16 %v1325_v21, %v1325_v21 }
 0x405   : > { %1926 = vmatmul.msk.bf16.vlgmr.msrb.gmra.mxu1 %vm1194_vm11, %v1329_v23 }
 0x407   : > { %v2115_v25 = vpop.eup %2114 }
 0x408   : > { %v2117_v26 = vpop.eup %2116  ;;  %v1323_v27 = vmul.f32 %v2115_v25, %v2634_v63  ;;  %v1312_v28 = vpop.xlane.xlu2 %1311 }
 0x409   : > { %v1326_v29 = vmul.f32 %v2117_v26, %v2636_v0  ;;  %2118 = vrcp.f32 %v1312_v28 }
 0x40a   : > { %v1327_v30 = vpack.c.bf16 %v1323_v27, %v1323_v27 }
 0x40b   : > { %v1330_v32 = vpack.c.bf16 %v1326_v29, %v1326_v29 }
 0x40c   : > { %1924 = vmatmul.msk.bf16.vlgmr.msrb.gmra.mxu3 %vm1194_vm11, %v1327_v30 }
 0x40d   : > { %1927 = vmatmul.msk.bf16.vlgmr.msrb.gmra.mxu2 %vm1194_vm11, %v1330_v32 }
 0x40f   : > { %v2119_v59 = vpop.eup %2118 }
 0x410   : > { %v1324_v33 = vmul.f32 %v2119_v59, %v2642_v4 }
 0x412   : > { %v1328_v34 = vpack.c.bf16 %v1324_v33, %v1324_v33 }
 0x414   : > { %1925 = vmatmul.msk.bf16.vlgmr.msra.gmra.mxu0 %vm1194_vm11, %v1328_v34 }
 0x482   : > { %v1385_v35 = vpop.f32.mrf.mxu1 }
 0x483   : > { %v1408_v37 = vrot.slane %v1385_v35, 4 }
 0x48a   : > { %v1387_v36 = vpop.f32.mrf.mxu1 }
 0x48f   : > { %v1347_v63 = vpop.f32.mrf.mxu3 }
 0x490   : > { %v1410_v38 = vsel %vm858_vm10, %v1408_v37, %v1347_v63  ;;  %v1411_v0 = vrot.slane %v1347_v63, 4  ;;  %v1404_v39 = vpop.f32.mrf.mxu2 }
 0x491   : > { %v1416_v40 = vperm.slane %v1410_v38, %v2549_v17  ;;  %v1421_v41 = vrot.slane %v1404_v39, 4  ;;  %v1366_v42 = vpop.f32.mrf.mxu0 }
 0x492   : > { %v1412_v43 = vsel %vm858_vm10, %v1385_v35, %v1411_v0  ;;  %v1423_v44 = vrot.slane %v1366_v42, 4 }
 0x493   : > { %v1420_v4 = vperm.slane %v1412_v43, %v2549_v17  ;;  %v1435_v45 = vrot.slane %v1416_v40, 4  ;;  %v1422_v46 = vsel %vm858_vm10, %v1421_v41, %v1366_v42  ;;  %v1988_v42 = vld [vmem:[%s2836_s10] sm:$0xff] }
 0x494   : > { %v1424_v47 = vsel %vm858_vm10, %v1404_v39, %v1423_v44  ;;  %v1428_v48 = vperm.slane %v1422_v46, %v2549_v17 }
 0x495   : > { %v1447_v49 = vrot.slane %v1420_v4, 4  ;;  %v1432_v50 = vperm.slane %v1424_v47, %v2549_v17 }
 0x496   : > { %v1433_v51 = vrot.slane %v1428_v48, 4  ;;  %v1436_v52 = vsel %vm858_vm10, %v1428_v48, %v1435_v45 }
 0x497   : > { %v1444_v53 = vperm.slane %v1436_v52, %v2553_v31  ;;  %v1445_v54 = vrot.slane %v1432_v50, 4  ;;  %v1448_v55 = vsel %vm858_vm10, %v1432_v50, %v1447_v49  ;;  %v1349_v56 = vpop.f32.mrf.mxu3  ;;  %v2091_v49 = vld [vmem:[%s2837_s11] ss:$0 sm:$0xff] }
 0x498   : > { %v1434_v57 = vsel %vm858_vm10, %v1433_v51, %v1416_v40  ;;  %v1456_v58 = vperm.slane %v1448_v55, %v2553_v31  ;;  %v1406_v60 = vpop.f32.mrf.mxu2  ;;  %v2126_v52 = vld [vmem:[%s2493_s24] sm:$0xff]  ;;  %s2875_s24 = sld [smem:[#allocation22_spill]] }
 0x499   : > { %v1440_v61 = vperm.slane %v1434_v57, %v2553_v31  ;;  %v1446_v62 = vsel %vm858_vm10, %v1445_v54, %v1420_v4  ;;  %v1459_v1 = vrot.slane %v1444_v53, 4  ;;  %v1368_v2 = vpop.f32.mrf.mxu0 }
 0x49a   : > { %v1452_v3 = vperm.slane %v1446_v62, %v2553_v31  ;;  %v1463_v5 = vrot.slane %v1456_v58, 4  ;;  %v1991_v62 = vld [vmem:[#allocation8 + $0x8] sm:$0xff] }
 0x49b   : > { %v1457_v6 = vrot.slane %v1440_v61, 4  ;;  %v1460_v7 = vsel %vm858_vm10, 0.0, %v1459_v1  ;;  %v1465_v9 = vsel %vm858_vm10, %v1459_v1, %v1440_v61  ;;  %1666 = vmatpush.bf16.msrb.mxu0 %v1991_v62  ;;  %v1990_v1 = vld [vmem:[#allocation8] sm:$0xff] }
 0x49c   : > { %v1461_v10 = vrot.slane %v1452_v3, 4  ;;  %v1464_v11 = vsel %vm858_vm10, 0.0, %v1463_v5  ;;  %v1469_v12 = vperm.slane %v1465_v9, %v2549_v17  ;;  %v1470_v13 = vrot.slane %v1460_v7, 4 }
 0x49d   : > { %v1458_v14 = vsel %vm858_vm10, 0.0, %v1457_v6  ;;  %v1481_v15 = vrot.slane %v1464_v11, 4  ;;  %v1476_v16 = vsel %vm858_vm10, %v1463_v5, %v1452_v3 }
 0x49e   : > { %v1462_v18 = vsel %vm858_vm10, 0.0, %v1461_v10  ;;  %v1471_v19 = vsel %vm858_vm10, %v1470_v13, %v1458_v14  ;;  %v1480_v20 = vperm.slane %v1476_v16, %v2549_v17  ;;  %v1489_v21 = vrot.slane %v1469_v12, 4 }
 0x49f   : > { %v1475_v22 = vperm.slane %v1471_v19, %v2549_v17  ;;  %v1482_v23 = vsel %vm858_vm10, %v1481_v15, %v1462_v18  ;;  %1667 = vmatpush.bf16.msrb.mxu0 %v1990_v1 }
 0x4a0   : > { %v1486_v25 = vperm.slane %v1482_v23, %v2549_v17  ;;  %v1501_v26 = vrot.slane %v1480_v20, 4 }
 0x4a1   : > { %v1490_v27 = vsel %vm858_vm10, %v1475_v22, %v1489_v21  ;;  %v1487_v28 = vrot.slane %v1475_v22, 4  ;;  %v2092_v22 = vld [vmem:[%s2873_s14] ss:$0 sm:$0xff] }
 0x4a2   : > { %v1498_v29 = vperm.slane %v1490_v27, %v2553_v31  ;;  %v1502_v30 = vsel %vm858_vm10, %v1486_v25, %v1501_v26  ;;  %v1499_v32 = vrot.slane %v1486_v25, 4 }
 0x4a3   : > { %v1510_v59 = vperm.slane %v1502_v30, %v2553_v31  ;;  %v1488_v33 = vsel %vm858_vm10, %v1487_v28, %v1469_v12  ;;  %v1998_v12 = vld [vmem:[%s2872_s1 + $0x30] sm:$0xff]  ;;  %v2093_v30 = vld [vmem:[%s2874_s17] ss:$0 sm:$0xff]  ;;  %s1778_s17 = scalar_lea.hbm %s2877_s16, %s1979_s25 }
 0x4a4   : > { %v1517_v34 = vrot.slane %v1498_v29, 4  ;;  %v1494_v35 = vperm.slane %v1488_v33, %v2553_v31  ;;  %v1500_v36 = vsel %vm858_vm10, %v1499_v32, %v1480_v20 }
 0x4a5   : > { %v1515_v37 = vrot.slane %v1510_v59, 4  ;;  %v1506_v17 = vperm.slane %v1500_v36, %v2553_v31  ;;  %v1989_v31 = vld [vmem:[%s2836_s10 + $0x8] sm:$0xff]  ;;  %v1996_v36 = vld [vmem:[%s2872_s1 + $0x20] sm:$0xff] }
 0x4a6   : > { %v1518_v63 = vsel %vm858_vm10, %v1510_v59, %v1517_v34  ;;  %v1513_v38 = vrot.slane %v1494_v35, 4  ;;  %1566 = vmatpush.bf16.msra.mxu3 %v1989_v31 }
 0x4a7   : > { %1528 = vrot.lane.b32.xlu0 %v1518_v63, %s2285_s12  ;;  %v1516_v0 = vsel %vm858_vm10, %v1515_v37, %v1498_v29  ;;  %v1511_v39 = vrot.slane %v1506_v17, 4  ;;  %v1995_v37 = vld [vmem:[%s2872_s1 + $0x18] sm:$0xff]  ;;  %v1993_v63 = vld [vmem:[%s2872_s1 + $0x8] sm:$0xff] }
 0x4a8   : > { %1524 = vrot.lane.b32.xlu2 %v1516_v0, %s2286_s22  ;;  %v1514_v40 = vsel %vm858_vm10, %v1506_v17, %v1513_v38  ;;  %v1994_v17 = vld [vmem:[%s2872_s1 + $0x10] sm:$0xff]  ;;  %v1992_v38 = vld [vmem:[%s2872_s1] sm:$0xff] }
 0x4a9   : > { %1520 = vrot.lane.b32.xlu1 %v1514_v40, %s2287_s13  ;;  %v1512_v41 = vsel %vm858_vm10, %v1511_v39, %v1494_v35  ;;  %v1997_v35 = vld [vmem:[%s2872_s1 + $0x28] sm:$0xff]  ;;  %v2094_v0 = vld [vmem:[%s2875_s24] ss:$0 sm:$0xff]  ;;  %s2876_s13 = sld [smem:[#allocation24_spill]]  ;;  %s1782_s24 = sshll.u32 %s1778_s17, 4  ;;  %s1783_s24 = int_to_ptr.hbm [resolvable:$true] %s1782_s24 }
 0x4aa   : > { %1567 = vmatpush.bf16.msra.mxu3 %v1988_v42 }
 0x502   : > { %v1525_v44 = vpop.permute.xlu2 %1524 }
 0x519   : > { %v1529_v45 = vpop.permute.xlu0 %1528 }
 0x51b   : > { %v1521_v43 = vpop.permute.xlu1 %1520 }
 0x51c   : > { %v1531_v4 = vsel %vm1194_vm11, %v1512_v41, %v1521_v43 }
 0x51d   : > { %v1533_v46 = vsel %vm1532_vm13, %v1531_v4, %v1525_v44 }
 0x51e   : > { %v1535_v47 = vsel %vm1534_vm14, %v1533_v46, %v1529_v45 }
 0x51f   : > { %v1536_v48 = vpack.c.bf16 %v1535_v47, %v1535_v47 }
 0x521   : > { %1936 = vmatmul.msk.bf16.vlgmr.msra.gmra.mxu3 %vm645_vm0, %v1536_v48 }
 0x5a4   : > { %v1569_v50 = vpop.f32.mrf.mxu3 }
 0x5a5   : > { %v1570_v51 = vadd.f32 %v2091_v49, %v1569_v50  ;;  %v2095_v50 = vld [vmem:[%s2876_s13] ss:$0 sm:$0xff] }
 0x5a7   : > { %v2740_v53 = vadd.f32 %v2126_v52, %v1570_v51 }
 0x5a9   : > { %v1576_v54 = vsel %vm645_vm0, %v2740_v53, 0.0 }
 0x5aa   : > { %1577 = vadd.xlane.f32.xlu1 %v1576_v54 }
 0x5ac   : > { %v1571_v55 = vpop.f32.mrf.mxu3 }
 0x61d   : > { %v1578_v56 = vpop.xlane.xlu1 %1577 }
 0x61e   : > { %v1586_v57 = vmul.f32 %v1578_v56, %v2497_v8  ;;  %v1999_v8 = vld [vmem:[%s2872_s1 + $0x38] sm:$0xff]  ;;  %s2201_s1 = sshra.s32 %s1783_s24, 4  ;;  %s2202_s1 = int_to_ptr.hbm [resolvable:$true] %s2201_s1 }
 0x61f   : > { %1751 = vmatpush.bf16.msra.mxu1 %v1999_v8  ;;  %s2203_s12 = scalar_lea.hbm %s2202_s1, 8  ;;  %p2208_p11 = scmp.lt.s32.totalorder %s2202_s1, %s2877_s16 }
 0x620   : > { %v1587_v58 = vsub.f32 %v2740_v53, %v1586_v57  ;;  %p2204_p1 = scmp.ne.s32.totalorder %s2202_s1, %s2203_s12  ;;  %p2209_p12 = scmp.lt.s32.totalorder %s2207_s2, %s2203_s12 }
 0x622   : > { %v1588_v60 = vmul.f32 %v1587_v58, %v1587_v58  ;;  %v1603_v28 = vmul.f32 %v2092_v22, %v1587_v58  ;;  %p2205_p9 = pnand %p2204_p1, %p2454_p4  ;;  %p2210_p13 = por %p2209_p12, %p2208_p11 }
 0x623   : > { %1752 = vmatpush.bf16.msra.mxu1 %v1998_v12 }
 0x624   : > { %v1589_v61 = vsel %vm645_vm0, %v1588_v60, 0.0  ;;  %p2206_p10 = pneg %p2205_p9 }
 0x625   : > { %1590 = vadd.xlane.f32.xlu0 %v1589_v61 }
 0x626   : > { %p2211_p0 = pnand %p2210_p13, %p2206_p10 }
 0x627   : > { %1753 = vmatpush.bf16.msra.mxu1 %v1997_v35 }
 0x62b   : > { %1754 = vmatpush.bf16.msra.mxu1 %v1996_v36 }
 0x62f   : > { %1755 = vmatpush.bf16.msra.mxu1 %v1995_v37 }
 0x633   : > { %1756 = vmatpush.bf16.msra.mxu1 %v1994_v17 }
 0x637   : > { %1757 = vmatpush.bf16.msra.mxu1 %v1993_v63 }
 0x63b   : > { %1758 = vmatpush.bf16.msra.mxu1 %v1992_v38 }
 0x698   : > { %v1591_v2 = vpop.xlane.xlu0 %1590 }
 0x699   : > { %v1599_v3 = vmul.f32 %v1591_v2, %v2513_v24 }
 0x69b   : > { %2120 = vrsqrt.f32 %v1599_v3  ;;  %vm1611_vm15 = vcmp.eq.f32.partialorder %v1599_v3, inf  ;;  %v1614_v14 = vand.u32 2147483648, %v1599_v3  ;;  %vm1613_vm1 = vcmp.eq.f32.partialorder %v1599_v3, 0.0 }
 0x6a1   : > { %v2121_v5 = vpop.eup %2120 }
 0x6a2   : > { %v1605_v6 = vmul.f32 %v2121_v5, %v1599_v3 }
 0x6a4   : > { %v1606_v7 = vmul.f32 %v2121_v5, %v1605_v6 }
 0x6a6   : > { %v1607_v9 = vmul.f32 0.5, %v1606_v7 }
 0x6a8   : > { %v1608_v10 = vsub.f32 1.5, %v1607_v9 }
 0x6aa   : > { %v1609_v11 = vmul.f32 %v2121_v5, %v1608_v10 }
 0x6ac   : > { %v1610_v13 = vmul.f32 %v1609_v11, %v1599_v3 }
 0x6ae   : > { %v1612_v24 = vsel %vm1611_vm15, %v1599_v3, %v1610_v13 }
 0x6af   : > { %v1615_v15 = vsel %vm1613_vm1, %v1614_v14, %v1612_v24 }
 0x6b0   : > { %v1616_v16 = vadd.f32 1e-06, %v1615_v15 }
 0x6b2   : > { %2122 = vrcp.f32 %v1616_v16  ;;  %v1628_v21 = vand.u32 2147483648, %v1616_v16  ;;  %v1626_v25 = vand.u32 2147483647, %v1616_v16  ;;  %vm1622_vm3 = vweird.f32 %v1616_v16 }
 0x6b4   : > { %v1629_v27 = vor.u32 1.1754944e-38, %v1628_v21  ;;  %vm1627_vm5 = vcmp.eq.f32.partialorder %v1626_v25, 8.507059e+37 }
 0x6b8   : > { %v2123_v18 = vpop.eup %2122 }
 0x6b9   : > { %v1618_v19 = vmul.f32 %v2123_v18, %v1616_v16  ;;  %vm1623_vm2 = vweird.f32 %v2123_v18 }
 0x6ba   : > { %vm1624_vm4 = vmor %vm1622_vm3, %vm1623_vm2 }
 0x6bb   : > { %v1619_v20 = vsub.f32 1.0, %v1618_v19 }
 0x6bd   : > { %v1620_v23 = vmul.f32 %v2123_v18, %v1619_v20 }
 0x6bf   : > { %v1621_v26 = vadd.f32 %v2123_v18, %v1620_v23 }
 0x6c1   : > { %v1625_v29 = vsel %vm1624_vm4, %v2123_v18, %v1621_v26 }
 0x6c2   : > { %v1630_v32 = vsel %vm1627_vm5, %v1629_v27, %v1625_v29 }
 0x6c3   : > { %v1631_v59 = vmul.f32 %v1630_v32, %v1603_v28 }
 0x6c5   : > { %v1635_v33 = vadd.f32 %v2093_v30, %v1631_v59 }
 0x6c7   : > { %v1636_v34 = vpack.c.bf16 %v1635_v33, %v1635_v33 }
 0x6c9   : > { %1945 = vmatmul.msk.bf16.vlgmr.msrb.gmra.mxu0 %vm645_vm0, %v1636_v34 }
 0x746   : > { %v1669_v39 = vpop.f32.mrf.mxu0 }
 0x747   : > { %v1670_v40 = vadd.f32 %v2094_v0, %v1669_v39 }
 0x749   : > { %v1674_v41 = vmul.f32 0.044715, %v1670_v40  ;;  %v1673_v46 = vmul.f32 0.5, %v1670_v40 }
 0x74b   : > { %v1675_v31 = vmul.f32 %v1674_v41, %v1670_v40 }
 0x74d   : > { %v1676_v42 = vmul.f32 %v1675_v31, %v1670_v40 }
 0x74e   : > { %v1671_v43 = vpop.f32.mrf.mxu0 }
 0x74f   : > { %v1677_v44 = vadd.f32 %v1676_v42, %v1670_v40 }
 0x751   : > { %v1678_v4 = vmul.f32 0.7978846, %v1677_v44 }
 0x753   : > { %2124 = vtanh.f32 %v1678_v4 }
 0x759   : > { %v2125_v45 = vpop.eup %2124 }
 0x75a   : > { %v1680_v47 = vadd.f32 1.0, %v2125_v45 }
 0x75c   : > { %v1681_v48 = vmul.f32 %v1680_v47, %v1673_v46 }
 0x75e   : > { %v1682_v49 = vpack.c.bf16 %v1681_v48, %v1681_v48 }
 0x760   : > { %1759 = vmatmul.bf16.vlgmr.msra.gmra.mxu1 %v1682_v49 }
 0x7dd   : > { %v1760_v51 = vpop.f32.mrf.mxu1 }
 0x7de   : > { %v1761_v52 = vadd.f32 %v2095_v50, %v1760_v51 }
 0x7e0   : > { %v1764_v54 = vadd.f32 %v1761_v52, %v2740_v53 }
 0x7e2   : > { %1765 = vst.msk [vmem:[%s632_s23] sm:$0xff] %vm645_vm0, %v1764_v54 }
 0x7e3   : > { %2214 = shalt.err (!%p2211_p0)
}
 0x7e4   : > { %2006 = dma.vmem_to_hbm [thread:$0]  (%p2454_p4), %s1781_s20, 128, %s1783_s24, %s1767_s30  }
 0x7e5   : > { %v1762_v53 = vpop.f32.mrf.mxu1 }
 0x7e6 PF: > { %s2878_s18 = sld [smem:[#allocation14_spill]]  ;;  %p2017_p2 = pnand %p1888_p6, %p2462_p7 }
 0x7e8   : > { %p2018_p5 = pneg %p2017_p2 }
 0x7ec   : > { %s1794_s15 = sand.u32 1, %s2878_s18  }
 0x7ed   : > { %s1795_s17 = scalar_lea.sflag [#allocation7], %s1794_s15 }
 0x7ee   : > { %2248 = dma.done.wait (%p2018_p5), %s1795_s17, 128  }
 0x7ef   : > { %2250 = vsyncadd (%p2018_p5), %s1795_s17, 4294967168  ;;  %s35_s19 = sadd.s32 1, %s2273_s19   ;;  %s2879_s26 = sld [smem:[#allocation15_spill]] }
 0x7f0   : > { %p32_p8 = scmp.ge.s32.totalorder %s35_s19, 4   ;;  %s2880_s27 = smov %s2257_s28 }
 0x7f1   : > { %s2881_s28 = smov %s2261_s29  ;;  %s2882_s29 = smov %s2460_s21 }
 0x7f2   : > { %s2883_s30 = smov %s2269_s0  ;;  %34 = sbr.rel (!%p32_p8) target bundleno = 18 (0x12), region = 150 }
 0x7f5   : > { %s2884_s0 = smov %s2879_s26 }
 0x7f7   :  { %1801 = vsyncpa [#allocation6], 1 }
 0x7f8   :  { %1803 = vsyncpa [#allocation6 + $0x1], 1 }
 0x7f9   :  { %1804 = vsyncpa [#allocation9], 1 }
 0x7fa   :  { %1805 = vsyncpa [#allocation7], 1 }
 0x7fb   :  { %1807 = vsyncpa [#allocation7 + $0x1], 1 }

</bundles_post_ra>
